<compile_context>
chip_gen: v5e
topology: v5e:2x2
jax: 0.10.0
libtpu: 0.0.40
codegen_flags: <defaults>
</compile_context>

<pallas_src>
import jax
import jax.numpy as jnp
from jax.experimental import pallas as pl
from jax.experimental.pallas import tpu as pltpu

BN_EPS = 1e-5
K_SIZE = 4          # every (transposed) conv: kernel 4, stride 2, padding 1
CPAD = 128          # lane-dense padded output-channel width (interior layers)

# (Cin, Cout, has_bn_relu)
ENCODER_CFG = [(3, 8, True), (8, 16, True), (16, 32, True), (32, 64, False)]
DECODER_CFG = [(64, 32, True), (32, 16, True), (16, 8, True), (8, 3, False)]

# Transposed-conv phase decomposition with a SHARED 3x3-tap LHS:
# tap offset o in {0,1,2} reads padded-input window xp[:, o:o+h, ...];
# KH_OF[phase][o] is the kernel index used by that phase (missing -> zero).
KH_OF = ({0: 3, 1: 1}, {1: 2, 2: 0})

_CPARAMS = pltpu.CompilerParams(
    dimension_semantics=("parallel", "parallel"),
    vmem_limit_bytes=24 * 1024 * 1024,   # explicit budget; v7x physical VMEM is 64 MiB
)


# ---------------------------------------------------------------------------
# Pallas kernels
# ---------------------------------------------------------------------------
def _gemm_bias_kernel(p_ref, w_ref, b_ref, y_ref):
    """y = patches @ W + b (bf16 operands, f32 accumulate)."""
    acc = jnp.dot(p_ref[...], w_ref[0], preferred_element_type=jnp.float32)
    y_ref[0] = (acc + b_ref[...]).astype(y_ref.dtype)


def _gemm_stats_kernel(p_ref, w_ref, y_ref, s_ref, ss_ref):
    """Bias-free GEMM + per-tile partial sum / sum-of-squares for BatchNorm.

    Stats are computed from the f32 accumulator; the intermediate activation is
    stored bf16 to halve the write+read traffic of the largest array.
    """
    acc = jnp.dot(p_ref[...], w_ref[0], preferred_element_type=jnp.float32)
    y_ref[0] = acc.astype(y_ref.dtype)
    s_ref[0, 0] = jnp.sum(acc, axis=0, keepdims=True)
    ss_ref[0, 0] = jnp.sum(acc * acc, axis=0, keepdims=True)


def _scale_shift_relu_kernel(y_ref, sc_ref, sh_ref, o_ref):
    """Fused BatchNorm (precomputed scale/shift) + ReLU epilogue (f32 math)."""
    y = y_ref[0].astype(jnp.float32)
    o_ref[0] = jnp.maximum(y * sc_ref[...] + sh_ref[...], 0.0).astype(o_ref.dtype)


# ---------------------------------------------------------------------------
# Fused layer driver: lane-dense GEMM (+ BN finalize + fused BN/ReLU pass)
# ---------------------------------------------------------------------------
def _row_tiling(m, n_ph):
    """Pick (padded_rows, tile_rows).

    Rows are padded to a multiple of 8 (never an unbounded single block); the
    largest power-of-two tile <= 2048 dividing the padded count is used.  The
    double-buffered working set at tm=2048, K<=576 is ~6 MB, well under the
    explicit 24 MiB VMEM budget.
    """
    if m <= 8:
        return m, m                      # full-extent block (equals the array dim)
    mp = ((m + 7) // 8) * 8
    tm = 8
    for t in (2048, 1024, 512, 256, 128, 64, 32, 16, 8):
        if mp % t == 0:
            tm = t
            break
    # v7x has 2 TensorCores: if this layer has a single phase and a single M
    # tile, halve the tile so a "parallel" axis has >= 2 steps (no-op on 1-TC
    # v5e/v6e beyond slightly smaller tiles).
    if n_ph == 1 and mp // tm == 1 and tm >= 16:
        tm //= 2
    return mp, tm


def fused_conv_gemm(patches, w2, bias, gamma, beta, *, use_bn_relu, out_dtype):
    """patches: [M, K] bf16 (shared by all phases), w2: [P, K, Cpad] bf16.

    Returns [P, Mp, Cpad] activations (Mp = M padded to the tile, channels
    zero-padded to Cpad lanes).  The phase axis is innermost in the grid so the
    shared patches block is only DMA'd once per row tile.
    """
    m, k = patches.shape
    n_ph, _, cpad = w2.shape
    mp, tm = _row_tiling(m, n_ph)
    if mp != m:
        patches = jnp.pad(patches, ((0, mp - m), (0, 0)))
    n_mt = mp // tm
    grid = (n_mt, n_ph)

    p_spec = pl.BlockSpec((tm, k), lambda i, p: (i, 0))          # constant in p
    w_spec = pl.BlockSpec((1, k, cpad), lambda i, p: (p, 0, 0))
    v_spec = pl.BlockSpec((1, cpad), lambda i, p: (0, 0))        # bias / scale / shift
    y_spec = pl.BlockSpec((1, tm, cpad), lambda i, p: (p, i, 0))
    st_spec = pl.BlockSpec((1, 1, 1, cpad), lambda i, p: (p, i, 0, 0))

    if not use_bn_relu:
        return pl.pallas_call(
            _gemm_bias_kernel,
            out_shape=jax.ShapeDtypeStruct((n_ph, mp, cpad), out_dtype),
            grid=grid,
            in_specs=[p_spec, w_spec, v_spec],
            out_specs=y_spec,
            compiler_params=_CPARAMS,
        )(patches, w2, bias)

    # Bias-free GEMM (BN cancels the conv bias exactly) + partial statistics.
    y, psum, psumsq = pl.pallas_call(
        _gemm_stats_kernel,
        out_shape=(
            jax.ShapeDtypeStruct((n_ph, mp, cpad), jnp.bfloat16),   # bf16 intermediate
            jax.ShapeDtypeStruct((n_ph, n_mt, 1, cpad), jnp.float32),
            jax.ShapeDtypeStruct((n_ph, n_mt, 1, cpad), jnp.float32),
        ),
        grid=grid,
        in_specs=[p_spec, w_spec],
        out_specs=(y_spec, st_spec, st_spec),
        compiler_params=_CPARAMS,
    )(patches, w2)

    # Tiny BatchNorm finalize on [Cpad] vectors (training-mode batch stats,
    # biased single-pass variance - bias-free y keeps the means small).  Padded
    # rows are exact zeros, so dividing by the true count keeps stats correct.
    count = jnp.float32(n_ph * m)
    mean = jnp.sum(psum, axis=(0, 1, 2)) / count
    var = jnp.maximum(jnp.sum(psumsq, axis=(0, 1, 2)) / count - mean * mean, 0.0)
    inv = jax.lax.rsqrt(var + BN_EPS)
    scale = (gamma * inv)[None, :]                     # [1, Cpad] f32
    shift = (beta - mean * gamma * inv)[None, :]       # [1, Cpad] f32

    return pl.pallas_call(
        _scale_shift_relu_kernel,
        out_shape=jax.ShapeDtypeStruct((n_ph, mp, cpad), out_dtype),
        grid=grid,
        in_specs=[y_spec, v_spec, v_spec],
        out_specs=y_spec,
        compiler_params=_CPARAMS,
    )(y, scale, shift)


# ---------------------------------------------------------------------------
# Layer wrappers (NHWC activations throughout)
# ---------------------------------------------------------------------------
def conv2d_s2(x, p, cout, *, use_bn_relu, out_dtype):
    """Conv2d(k=4, s=2, p=1) [+BN+ReLU].  x: [N, H, W, Cin] (NHWC, bf16)."""
    n, h, w, c = x.shape
    ho, wo = h // 2, w // 2
    xp = jnp.pad(x, ((0, 0), (1, 1), (1, 1), (0, 0)))
    # NHWC im2col: 16 strided slices concatenated on the channel axis.
    # K-order = (kh, kw, cin).
    cols = [xp[:, kh:kh + 2 * ho - 1:2, kw:kw + 2 * wo - 1:2, :]
            for kh in range(K_SIZE) for kw in range(K_SIZE)]
    patches = jnp.concatenate(cols, axis=-1).reshape(n * ho * wo, K_SIZE * K_SIZE * c)
    y = fused_conv_gemm(patches, p["w2"], p.get("b"), p.get("gamma"), p.get("beta"),
                        use_bn_relu=use_bn_relu, out_dtype=out_dtype)
    m = n * ho * wo
    return y[0, :m, :cout].reshape(n, ho, wo, cout)


def conv_transpose2d_s2(x, p, cout, *, use_bn_relu, out_dtype):
    """ConvTranspose2d(k=4, s=2, p=1) [+BN+ReLU] via subpixel phase decomposition.

    All 4 output phases share a single 3x3-tap im2col LHS (offsets 0..2 of the
    padded input); each phase's packed weight selects its 2x2 taps and zeros
    the rest, so no per-phase patch duplication is written to HBM.
    """
    n, h, w, c = x.shape
    xp = jnp.pad(x, ((0, 0), (1, 1), (1, 1), (0, 0)))
    cols = [xp[:, orr:orr + h, occ:occ + w, :]
            for orr in range(3) for occ in range(3)]
    patches = jnp.concatenate(cols, axis=-1).reshape(n * h * w, 9 * c)
    y = fused_conv_gemm(patches, p["w2"], p.get("b"), p.get("gamma"), p.get("beta"),
                        use_bn_relu=use_bn_relu, out_dtype=out_dtype)
    m = n * h * w
    # [4, Mp, Cpad] -> interleave the phases into [N, 2h, 2w, Cout].
    y = y[:, :m, :cout].reshape(2, 2, n, h, w, cout)
    y = y.transpose(2, 3, 0, 4, 1, 5).reshape(n, 2 * h, 2 * w, cout)
    return y


# ---------------------------------------------------------------------------
# Parameter construction (deterministic, synthetic; pre-packed GEMM layout)
# ---------------------------------------------------------------------------
def _pad_cols(a, width):
    return jnp.pad(a, ((0, 0), (0, width - a.shape[1])))


def init_params(key):
    params = {"enc": [], "dec": []}
    keys = jax.random.split(key, len(ENCODER_CFG) + len(DECODER_CFG))

    def common(kb, cout, has_bn, cpad):
        layer = {}
        if has_bn:
            # BN cancels the conv bias exactly -> no bias parameter at all.
            # BatchNorm2d default affine init (weight=1, bias=0); padded lanes
            # are inert (var=0 -> y stays 0) and sliced off after each layer.
            layer["gamma"] = jnp.ones((cpad,), jnp.float32)
            layer["beta"] = jnp.zeros((cpad,), jnp.float32)
        else:
            b = jax.random.normal(kb, (cout,), jnp.float32) * 0.01
            layer["b"] = _pad_cols(b[None, :], cpad)            # [1, cpad]
        return layer

    for i, (cin, cout, has_bn) in enumerate(ENCODER_CFG):
        kw_, kb = jax.random.split(keys[i])
        scale = 1.0 / jnp.sqrt(jnp.float32(cin * K_SIZE * K_SIZE))
        w = jax.random.normal(kw_, (cout, cin, K_SIZE, K_SIZE), jnp.float32) * scale
        # GEMM weight: K-order (kh, kw, cin), Cout zero-padded to 128 lanes.
        w2 = _pad_cols(w.transpose(2, 3, 1, 0).reshape(K_SIZE * K_SIZE * cin, cout), CPAD)
        layer = common(kb, cout, has_bn, CPAD)
        layer["w2"] = w2.astype(jnp.bfloat16)[None]              # [1, K, 128]
        params["enc"].append(layer)

    for i, (cin, cout, has_bn) in enumerate(DECODER_CFG):
        kw_, kb = jax.random.split(keys[len(ENCODER_CFG) + i])
        scale = 1.0 / jnp.sqrt(jnp.float32(cin * K_SIZE * K_SIZE))   # synthetic init
        # PyTorch ConvTranspose2d weight layout: [Cin, Cout, kH, kW].
        w = jax.random.normal(kw_, (cin, cout, K_SIZE, K_SIZE), jnp.float32) * scale
        # Final layer writes a narrow (8-lane) slab; interior layers stay 128.
        cpad = 8 if i == len(DECODER_CFG) - 1 else CPAD
        # One [9*Cin, cpad] GEMM weight per output phase over the shared
        # 3x3-tap LHS; taps not used by the phase get zero weight rows.
        phase_ws = []
        for ph in (0, 1):
            for pw in (0, 1):
                blocks = []
                for orr in range(3):
                    for occ in range(3):
                        kh = KH_OF[ph].get(orr)
                        kwi = KH_OF[pw].get(occ)
                        if kh is None or kwi is None:
                            blocks.append(jnp.zeros((cin, cout), jnp.float32))
                        else:
                            blocks.append(w[:, :, kh, kwi])
                phase_ws.append(_pad_cols(jnp.stack(blocks, 0).reshape(9 * cin, cout), cpad))
        layer = common(kb, cout, has_bn, cpad)
        layer["w2"] = jnp.stack(phase_ws, 0).astype(jnp.bfloat16)    # [4, 9*Cin, cpad]
        params["dec"].append(layer)

    return params


# ---------------------------------------------------------------------------
# Forward pass (encoder == conv1, decoder == conv2)
# ---------------------------------------------------------------------------
@jax.jit
def fully_conv_network(params, x):
    """x: [N, 3, H, W] float32 (NCHW, like PyTorch).  Returns [N, 3, H, W] f32."""
    h = jnp.transpose(x, (0, 2, 3, 1)).astype(jnp.bfloat16)   # single NCHW -> NHWC
    for p, (_, cout, bn) in zip(params["enc"], ENCODER_CFG):
        h = conv2d_s2(h, p, cout, use_bn_relu=bn, out_dtype=jnp.bfloat16)
    encoded = h                                                # [N, H/16, W/16, 64]
    h = encoded
    for li, (p, (_, cout, bn)) in enumerate(zip(params["dec"], DECODER_CFG)):
        last = li == len(DECODER_CFG) - 1
        h = conv_transpose2d_s2(h, p, cout, use_bn_relu=bn,
                                out_dtype=jnp.float32 if last else jnp.bfloat16)
    return jnp.transpose(h, (0, 3, 1, 2))                      # single NHWC -> NCHW


if __name__ == "__main__":
    key = jax.random.PRNGKey(0)
    k_param, k_x = jax.random.split(key)
    params = init_params(k_param)
    x = jax.random.normal(k_x, (2, 3, 16, 16), jnp.float32)    # NCHW, like PyTorch

    out = jax.block_until_ready(fully_conv_network(params, x))

    assert out.shape == (2, 3, 16, 16), out.shape
    assert out.dtype == jnp.float32
    assert bool(jnp.all(jnp.isfinite(out)))
    print("KERNEL_OK")
</pallas_src>

<mosaic_0001>
module attributes {stable_mosaic.version = 11 : i64} {
  func.func @_gemm_stats_kernel(%arg0: i32, %arg1: i32, %arg2: memref<64x48xbf16, #tpu.memory_space<vmem>>, %arg3: memref<1x48x128xbf16, #tpu.memory_space<vmem>>, %arg4: memref<1x64x128xbf16, #tpu.memory_space<vmem>>, %arg5: memref<1x1x1x128xf32, #tpu.memory_space<vmem>>, %arg6: memref<1x1x1x128xf32, #tpu.memory_space<vmem>>) attributes {dimension_semantics = [#tpu.dimension_semantics<parallel>, #tpu.dimension_semantics<parallel>], iteration_bounds = array<i64: 2, 1>, scalar_prefetch = 0 : i64, scratch_operands = 0 : i64, tpu.core_type = #tpu.core_type<tc>, window_params = [{transform_indices = @transform_0, window_bounds = array<i64: 64, 48>}, {transform_indices = @transform_1, window_bounds = array<i64: 1, 48, 128>}, {transform_indices = @transform_2, window_bounds = array<i64: 1, 64, 128>}, {transform_indices = @transform_3, window_bounds = array<i64: 1, 1, 1, 128>}, {transform_indices = @transform_4, window_bounds = array<i64: 1, 1, 1, 128>}]} {
    %c0 = arith.constant 0 : index
    %c0_0 = arith.constant 0 : index
    %0 = vector.load %arg2[%c0, %c0_0] : memref<64x48xbf16, #tpu.memory_space<vmem>>, vector<64x48xbf16>
    %c0_1 = arith.constant 0 : index
    %c0_2 = arith.constant 0 : index
    %c0_3 = arith.constant 0 : index
    %1 = vector.load %arg3[%c0_1, %c0_2, %c0_3] : memref<1x48x128xbf16, #tpu.memory_space<vmem>>, vector<1x48x128xbf16>
    %2 = vector.shape_cast %1 : vector<1x48x128xbf16> to vector<48x128xbf16>
    %cst = arith.constant dense<0.000000e+00> : vector<64x128xf32>
    %3 = tpu.matmul %0, %2, %cst {dimension_numbers = #tpu.dot_dimension_numbers<[1], [0], [0], [1], [0, 0, 1, 1], [], []>} : vector<64x48xbf16>, vector<48x128xbf16>, vector<64x128xf32> -> vector<64x128xf32>
    %4 = arith.truncf %3 : vector<64x128xf32> to vector<64x128xbf16>
    %c0_4 = arith.constant 0 : index
    %c0_5 = arith.constant 0 : index
    %c0_6 = arith.constant 0 : index
    %5 = vector.load %arg4[%c0_4, %c0_5, %c0_6] : memref<1x64x128xbf16, #tpu.memory_space<vmem>>, vector<1x64x128xbf16>
    %6 = vector.shape_cast %5 : vector<1x64x128xbf16> to vector<64x128xbf16>
    %7 = vector.shape_cast %4 : vector<64x128xbf16> to vector<1x64x128xbf16>
    tpu.vector_store %arg4[%c0_4, %c0_5, %c0_6], %7 {strides = array<i32>} : memref<1x64x128xbf16, #tpu.memory_space<vmem>>, vector<1x64x128xbf16>,
    %cst_7 = arith.constant dense<0.000000e+00> : vector<128xf32>
    %8 = vector.multi_reduction <add>, %3, %cst_7 [0] : vector<64x128xf32> to vector<128xf32>
    %9 = vector.shape_cast %8 : vector<128xf32> to vector<1x128xf32>
    %c0_8 = arith.constant 0 : index
    %c0_9 = arith.constant 0 : index
    %c0_10 = arith.constant 0 : index
    %c0_11 = arith.constant 0 : index
    %10 = vector.load %arg5[%c0_8, %c0_9, %c0_10, %c0_11] : memref<1x1x1x128xf32, #tpu.memory_space<vmem>>, vector<1x1x1x128xf32>
    %11 = vector.shape_cast %10 : vector<1x1x1x128xf32> to vector<1x128xf32>
    %12 = vector.shape_cast %9 : vector<1x128xf32> to vector<1x1x1x128xf32>
    tpu.vector_store %arg5[%c0_8, %c0_9, %c0_10, %c0_11], %12 {strides = array<i32>} : memref<1x1x1x128xf32, #tpu.memory_space<vmem>>, vector<1x1x1x128xf32>,
    %13 = arith.mulf %3, %3 : vector<64x128xf32>
    %cst_12 = arith.constant dense<0.000000e+00> : vector<128xf32>
    %14 = vector.multi_reduction <add>, %13, %cst_12 [0] : vector<64x128xf32> to vector<128xf32>
    %15 = vector.shape_cast %14 : vector<128xf32> to vector<1x128xf32>
    %c0_13 = arith.constant 0 : index
    %c0_14 = arith.constant 0 : index
    %c0_15 = arith.constant 0 : index
    %c0_16 = arith.constant 0 : index
    %16 = vector.load %arg6[%c0_13, %c0_14, %c0_15, %c0_16] : memref<1x1x1x128xf32, #tpu.memory_space<vmem>>, vector<1x1x1x128xf32>
    %17 = vector.shape_cast %16 : vector<1x1x1x128xf32> to vector<1x128xf32>
    %18 = vector.shape_cast %15 : vector<1x128xf32> to vector<1x1x1x128xf32>
    tpu.vector_store %arg6[%c0_13, %c0_14, %c0_15, %c0_16], %18 {strides = array<i32>} : memref<1x1x1x128xf32, #tpu.memory_space<vmem>>, vector<1x1x1x128xf32>,
    return
  }
  func.func @transform_0(%arg0: i32, %arg1: i32) -> (i32, i32) {
    %c0_i32 = arith.constant 0 : i32
    %c0_i32_0 = arith.constant 0 : i32
    return %arg0, %c0_i32 : i32, i32
  }
  func.func @transform_1(%arg0: i32, %arg1: i32) -> (i32, i32, i32) {
    %c0_i32 = arith.constant 0 : i32
    %c0_i32_0 = arith.constant 0 : i32
    %c0_i32_1 = arith.constant 0 : i32
    return %arg1, %c0_i32, %c0_i32_0 : i32, i32, i32
  }
  func.func @transform_2(%arg0: i32, %arg1: i32) -> (i32, i32, i32) {
    %c0_i32 = arith.constant 0 : i32
    %c0_i32_0 = arith.constant 0 : i32
    return %arg1, %arg0, %c0_i32 : i32, i32, i32
  }
  func.func @transform_3(%arg0: i32, %arg1: i32) -> (i32, i32, i32, i32) {
    %c0_i32 = arith.constant 0 : i32
    %c0_i32_0 = arith.constant 0 : i32
    %c0_i32_1 = arith.constant 0 : i32
    return %arg1, %arg0, %c0_i32, %c0_i32_0 : i32, i32, i32, i32
  }
  func.func @transform_4(%arg0: i32, %arg1: i32) -> (i32, i32, i32, i32) {
    %c0_i32 = arith.constant 0 : i32
    %c0_i32_0 = arith.constant 0 : i32
    %c0_i32_1 = arith.constant 0 : i32
    return %arg1, %arg0, %c0_i32, %c0_i32_0 : i32, i32, i32, i32
  }
}

module attributes {stable_mosaic.version = 11 : i64} {
  func.func @_scale_shift_relu_kernel(%arg0: i32, %arg1: i32, %arg2: memref<1x64x128xbf16, #tpu.memory_space<vmem>>, %arg3: memref<1x128xf32, #tpu.memory_space<vmem>>, %arg4: memref<1x128xf32, #tpu.memory_space<vmem>>, %arg5: memref<1x64x128xbf16, #tpu.memory_space<vmem>>) attributes {dimension_semantics = [#tpu.dimension_semantics<parallel>, #tpu.dimension_semantics<parallel>], iteration_bounds = array<i64: 2, 1>, scalar_prefetch = 0 : i64, scratch_operands = 0 : i64, tpu.core_type = #tpu.core_type<tc>, window_params = [{transform_indices = @transform_0, window_bounds = array<i64: 1, 64, 128>}, {pipeline_mode = #tpu.pipeline_mode<synchronous>, transform_indices = @transform_1, window_bounds = array<i64: 1, 128>}, {pipeline_mode = #tpu.pipeline_mode<synchronous>, transform_indices = @transform_2, window_bounds = array<i64: 1, 128>}, {transform_indices = @transform_3, window_bounds = array<i64: 1, 64, 128>}]} {
    %c0 = arith.constant 0 : index
    %c0_0 = arith.constant 0 : index
    %c0_1 = arith.constant 0 : index
    %0 = vector.load %arg2[%c0, %c0_0, %c0_1] : memref<1x64x128xbf16, #tpu.memory_space<vmem>>, vector<1x64x128xbf16>
    %1 = vector.shape_cast %0 : vector<1x64x128xbf16> to vector<64x128xbf16>
    %2 = arith.extf %1 : vector<64x128xbf16> to vector<64x128xf32>
    %c0_2 = arith.constant 0 : index
    %c0_3 = arith.constant 0 : index
    %3 = vector.load %arg3[%c0_2, %c0_3] : memref<1x128xf32, #tpu.memory_space<vmem>>, vector<1x128xf32>
    %4 = vector.broadcast %3 : vector<1x128xf32> to vector<64x128xf32>
    %5 = arith.mulf %2, %4 : vector<64x128xf32>
    %c0_4 = arith.constant 0 : index
    %c0_5 = arith.constant 0 : index
    %6 = vector.load %arg4[%c0_4, %c0_5] : memref<1x128xf32, #tpu.memory_space<vmem>>, vector<1x128xf32>
    %7 = vector.broadcast %6 : vector<1x128xf32> to vector<64x128xf32>
    %8 = arith.addf %5, %7 : vector<64x128xf32>
    %cst = arith.constant 0.000000e+00 : f32
    %9 = vector.broadcast %cst : f32 to vector<64x128xf32>
    %10 = arith.maximumf %8, %9 : vector<64x128xf32>
    %11 = arith.truncf %10 : vector<64x128xf32> to vector<64x128xbf16>
    %c0_6 = arith.constant 0 : index
    %c0_7 = arith.constant 0 : index
    %c0_8 = arith.constant 0 : index
    %12 = vector.load %arg5[%c0_6, %c0_7, %c0_8] : memref<1x64x128xbf16, #tpu.memory_space<vmem>>, vector<1x64x128xbf16>
    %13 = vector.shape_cast %12 : vector<1x64x128xbf16> to vector<64x128xbf16>
    %14 = vector.shape_cast %11 : vector<64x128xbf16> to vector<1x64x128xbf16>
    tpu.vector_store %arg5[%c0_6, %c0_7, %c0_8], %14 {strides = array<i32>} : memref<1x64x128xbf16, #tpu.memory_space<vmem>>, vector<1x64x128xbf16>,
    return
  }
  func.func @transform_0(%arg0: i32, %arg1: i32) -> (i32, i32, i32) {
    %c0_i32 = arith.constant 0 : i32
    %c0_i32_0 = arith.constant 0 : i32
    return %arg1, %arg0, %c0_i32 : i32, i32, i32
  }
  func.func @transform_1(%arg0: i32, %arg1: i32) -> (i32, i32) {
    %c0_i32 = arith.constant 0 : i32
    %c0_i32_0 = arith.constant 0 : i32
    %c0_i32_1 = arith.constant 0 : i32
    return %c0_i32, %c0_i32_0 : i32, i32
  }
  func.func @transform_2(%arg0: i32, %arg1: i32) -> (i32, i32) {
    %c0_i32 = arith.constant 0 : i32
    %c0_i32_0 = arith.constant 0 : i32
    %c0_i32_1 = arith.constant 0 : i32
    return %c0_i32, %c0_i32_0 : i32, i32
  }
  func.func @transform_3(%arg0: i32, %arg1: i32) -> (i32, i32, i32) {
    %c0_i32 = arith.constant 0 : i32
    %c0_i32_0 = arith.constant 0 : i32
    return %arg1, %arg0, %c0_i32 : i32, i32, i32
  }
}

module attributes {stable_mosaic.version = 11 : i64} {
  func.func @_gemm_stats_kernel(%arg0: i32, %arg1: i32, %arg2: memref<16x128xbf16, #tpu.memory_space<vmem>>, %arg3: memref<1x128x128xbf16, #tpu.memory_space<vmem>>, %arg4: memref<1x16x128xbf16, #tpu.memory_space<vmem>>, %arg5: memref<1x1x1x128xf32, #tpu.memory_space<vmem>>, %arg6: memref<1x1x1x128xf32, #tpu.memory_space<vmem>>) attributes {dimension_semantics = [#tpu.dimension_semantics<parallel>, #tpu.dimension_semantics<parallel>], iteration_bounds = array<i64: 2, 1>, scalar_prefetch = 0 : i64, scratch_operands = 0 : i64, tpu.core_type = #tpu.core_type<tc>, window_params = [{transform_indices = @transform_0, window_bounds = array<i64: 16, 128>}, {transform_indices = @transform_1, window_bounds = array<i64: 1, 128, 128>}, {transform_indices = @transform_2, window_bounds = array<i64: 1, 16, 128>}, {transform_indices = @transform_3, window_bounds = array<i64: 1, 1, 1, 128>}, {transform_indices = @transform_4, window_bounds = array<i64: 1, 1, 1, 128>}]} {
    %c0 = arith.constant 0 : index
    %c0_0 = arith.constant 0 : index
    %0 = vector.load %arg2[%c0, %c0_0] : memref<16x128xbf16, #tpu.memory_space<vmem>>, vector<16x128xbf16>
    %c0_1 = arith.constant 0 : index
    %c0_2 = arith.constant 0 : index
    %c0_3 = arith.constant 0 : index
    %1 = vector.load %arg3[%c0_1, %c0_2, %c0_3] : memref<1x128x128xbf16, #tpu.memory_space<vmem>>, vector<1x128x128xbf16>
    %2 = vector.shape_cast %1 : vector<1x128x128xbf16> to vector<128x128xbf16>
    %cst = arith.constant dense<0.000000e+00> : vector<16x128xf32>
    %3 = tpu.matmul %0, %2, %cst {dimension_numbers = #tpu.dot_dimension_numbers<[1], [0], [0], [1], [0, 0, 1, 1], [], []>} : vector<16x128xbf16>, vector<128x128xbf16>, vector<16x128xf32> -> vector<16x128xf32>
    %4 = arith.truncf %3 : vector<16x128xf32> to vector<16x128xbf16>
    %c0_4 = arith.constant 0 : index
    %c0_5 = arith.constant 0 : index
    %c0_6 = arith.constant 0 : index
    %5 = vector.load %arg4[%c0_4, %c0_5, %c0_6] : memref<1x16x128xbf16, #tpu.memory_space<vmem>>, vector<1x16x128xbf16>
    %6 = vector.shape_cast %5 : vector<1x16x128xbf16> to vector<16x128xbf16>
    %7 = vector.shape_cast %4 : vector<16x128xbf16> to vector<1x16x128xbf16>
    tpu.vector_store %arg4[%c0_4, %c0_5, %c0_6], %7 {strides = array<i32>} : memref<1x16x128xbf16, #tpu.memory_space<vmem>>, vector<1x16x128xbf16>,
    %cst_7 = arith.constant dense<0.000000e+00> : vector<128xf32>
    %8 = vector.multi_reduction <add>, %3, %cst_7 [0] : vector<16x128xf32> to vector<128xf32>
    %9 = vector.shape_cast %8 : vector<128xf32> to vector<1x128xf32>
    %c0_8 = arith.constant 0 : index
    %c0_9 = arith.constant 0 : index
    %c0_10 = arith.constant 0 : index
    %c0_11 = arith.constant 0 : index
    %10 = vector.load %arg5[%c0_8, %c0_9, %c0_10, %c0_11] : memref<1x1x1x128xf32, #tpu.memory_space<vmem>>, vector<1x1x1x128xf32>
    %11 = vector.shape_cast %10 : vector<1x1x1x128xf32> to vector<1x128xf32>
    %12 = vector.shape_cast %9 : vector<1x128xf32> to vector<1x1x1x128xf32>
    tpu.vector_store %arg5[%c0_8, %c0_9, %c0_10, %c0_11], %12 {strides = array<i32>} : memref<1x1x1x128xf32, #tpu.memory_space<vmem>>, vector<1x1x1x128xf32>,
    %13 = arith.mulf %3, %3 : vector<16x128xf32>
    %cst_12 = arith.constant dense<0.000000e+00> : vector<128xf32>
    %14 = vector.multi_reduction <add>, %13, %cst_12 [0] : vector<16x128xf32> to vector<128xf32>
    %15 = vector.shape_cast %14 : vector<128xf32> to vector<1x128xf32>
    %c0_13 = arith.constant 0 : index
    %c0_14 = arith.constant 0 : index
    %c0_15 = arith.constant 0 : index
    %c0_16 = arith.constant 0 : index
    %16 = vector.load %arg6[%c0_13, %c0_14, %c0_15, %c0_16] : memref<1x1x1x128xf32, #tpu.memory_space<vmem>>, vector<1x1x1x128xf32>
    %17 = vector.shape_cast %16 : vector<1x1x1x128xf32> to vector<1x128xf32>
    %18 = vector.shape_cast %15 : vector<1x128xf32> to vector<1x1x1x128xf32>
    tpu.vector_store %arg6[%c0_13, %c0_14, %c0_15, %c0_16], %18 {strides = array<i32>} : memref<1x1x1x128xf32, #tpu.memory_space<vmem>>, vector<1x1x1x128xf32>,
    return
  }
  func.func @transform_0(%arg0: i32, %arg1: i32) -> (i32, i32) {
    %c0_i32 = arith.constant 0 : i32
    %c0_i32_0 = arith.constant 0 : i32
    return %arg0, %c0_i32 : i32, i32
  }
  func.func @transform_1(%arg0: i32, %arg1: i32) -> (i32, i32, i32) {
    %c0_i32 = arith.constant 0 : i32
    %c0_i32_0 = arith.constant 0 : i32
    %c0_i32_1 = arith.constant 0 : i32
    return %arg1, %c0_i32, %c0_i32_0 : i32, i32, i32
  }
  func.func @transform_2(%arg0: i32, %arg1: i32) -> (i32, i32, i32) {
    %c0_i32 = arith.constant 0 : i32
    %c0_i32_0 = arith.constant 0 : i32
    return %arg1, %arg0, %c0_i32 : i32, i32, i32
  }
  func.func @transform_3(%arg0: i32, %arg1: i32) -> (i32, i32, i32, i32) {
    %c0_i32 = arith.constant 0 : i32
    %c0_i32_0 = arith.constant 0 : i32
    %c0_i32_1 = arith.constant 0 : i32
    return %arg1, %arg0, %c0_i32, %c0_i32_0 : i32, i32, i32, i32
  }
  func.func @transform_4(%arg0: i32, %arg1: i32) -> (i32, i32, i32, i32) {
    %c0_i32 = arith.constant 0 : i32
    %c0_i32_0 = arith.constant 0 : i32
    %c0_i32_1 = arith.constant 0 : i32
    return %arg1, %arg0, %c0_i32, %c0_i32_0 : i32, i32, i32, i32
  }
}

module attributes {stable_mosaic.version = 11 : i64} {
  func.func @_scale_shift_relu_kernel(%arg0: i32, %arg1: i32, %arg2: memref<1x16x128xbf16, #tpu.memory_space<vmem>>, %arg3: memref<1x128xf32, #tpu.memory_space<vmem>>, %arg4: memref<1x128xf32, #tpu.memory_space<vmem>>, %arg5: memref<1x16x128xbf16, #tpu.memory_space<vmem>>) attributes {dimension_semantics = [#tpu.dimension_semantics<parallel>, #tpu.dimension_semantics<parallel>], iteration_bounds = array<i64: 2, 1>, scalar_prefetch = 0 : i64, scratch_operands = 0 : i64, tpu.core_type = #tpu.core_type<tc>, window_params = [{transform_indices = @transform_0, window_bounds = array<i64: 1, 16, 128>}, {pipeline_mode = #tpu.pipeline_mode<synchronous>, transform_indices = @transform_1, window_bounds = array<i64: 1, 128>}, {pipeline_mode = #tpu.pipeline_mode<synchronous>, transform_indices = @transform_2, window_bounds = array<i64: 1, 128>}, {transform_indices = @transform_3, window_bounds = array<i64: 1, 16, 128>}]} {
    %c0 = arith.constant 0 : index
    %c0_0 = arith.constant 0 : index
    %c0_1 = arith.constant 0 : index
    %0 = vector.load %arg2[%c0, %c0_0, %c0_1] : memref<1x16x128xbf16, #tpu.memory_space<vmem>>, vector<1x16x128xbf16>
    %1 = vector.shape_cast %0 : vector<1x16x128xbf16> to vector<16x128xbf16>
    %2 = arith.extf %1 : vector<16x128xbf16> to vector<16x128xf32>
    %c0_2 = arith.constant 0 : index
    %c0_3 = arith.constant 0 : index
    %3 = vector.load %arg3[%c0_2, %c0_3] : memref<1x128xf32, #tpu.memory_space<vmem>>, vector<1x128xf32>
    %4 = vector.broadcast %3 : vector<1x128xf32> to vector<16x128xf32>
    %5 = arith.mulf %2, %4 : vector<16x128xf32>
    %c0_4 = arith.constant 0 : index
    %c0_5 = arith.constant 0 : index
    %6 = vector.load %arg4[%c0_4, %c0_5] : memref<1x128xf32, #tpu.memory_space<vmem>>, vector<1x128xf32>
    %7 = vector.broadcast %6 : vector<1x128xf32> to vector<16x128xf32>
    %8 = arith.addf %5, %7 : vector<16x128xf32>
    %cst = arith.constant 0.000000e+00 : f32
    %9 = vector.broadcast %cst : f32 to vector<16x128xf32>
    %10 = arith.maximumf %8, %9 : vector<16x128xf32>
    %11 = arith.truncf %10 : vector<16x128xf32> to vector<16x128xbf16>
    %c0_6 = arith.constant 0 : index
    %c0_7 = arith.constant 0 : index
    %c0_8 = arith.constant 0 : index
    %12 = vector.load %arg5[%c0_6, %c0_7, %c0_8] : memref<1x16x128xbf16, #tpu.memory_space<vmem>>, vector<1x16x128xbf16>
    %13 = vector.shape_cast %12 : vector<1x16x128xbf16> to vector<16x128xbf16>
    %14 = vector.shape_cast %11 : vector<16x128xbf16> to vector<1x16x128xbf16>
    tpu.vector_store %arg5[%c0_6, %c0_7, %c0_8], %14 {strides = array<i32>} : memref<1x16x128xbf16, #tpu.memory_space<vmem>>, vector<1x16x128xbf16>,
    return
  }
  func.func @transform_0(%arg0: i32, %arg1: i32) -> (i32, i32, i32) {
    %c0_i32 = arith.constant 0 : i32
    %c0_i32_0 = arith.constant 0 : i32
    return %arg1, %arg0, %c0_i32 : i32, i32, i32
  }
  func.func @transform_1(%arg0: i32, %arg1: i32) -> (i32, i32) {
    %c0_i32 = arith.constant 0 : i32
    %c0_i32_0 = arith.constant 0 : i32
    %c0_i32_1 = arith.constant 0 : i32
    return %c0_i32, %c0_i32_0 : i32, i32
  }
  func.func @transform_2(%arg0: i32, %arg1: i32) -> (i32, i32) {
    %c0_i32 = arith.constant 0 : i32
    %c0_i32_0 = arith.constant 0 : i32
    %c0_i32_1 = arith.constant 0 : i32
    return %c0_i32, %c0_i32_0 : i32, i32
  }
  func.func @transform_3(%arg0: i32, %arg1: i32) -> (i32, i32, i32) {
    %c0_i32 = arith.constant 0 : i32
    %c0_i32_0 = arith.constant 0 : i32
    return %arg1, %arg0, %c0_i32 : i32, i32, i32
  }
}

module attributes {stable_mosaic.version = 11 : i64} {
  func.func @_gemm_stats_kernel(%arg0: i32, %arg1: i32, %arg2: memref<8x256xbf16, #tpu.memory_space<vmem>>, %arg3: memref<1x256x128xbf16, #tpu.memory_space<vmem>>, %arg4: memref<1x8x128xbf16, #tpu.memory_space<vmem>>, %arg5: memref<1x1x1x128xf32, #tpu.memory_space<vmem>>, %arg6: memref<1x1x1x128xf32, #tpu.memory_space<vmem>>) attributes {dimension_semantics = [#tpu.dimension_semantics<parallel>, #tpu.dimension_semantics<parallel>], iteration_bounds = array<i64: 1, 1>, scalar_prefetch = 0 : i64, scratch_operands = 0 : i64, tpu.core_type = #tpu.core_type<tc>, window_params = [{transform_indices = @transform_0, window_bounds = array<i64: 8, 256>}, {transform_indices = @transform_1, window_bounds = array<i64: 1, 256, 128>}, {transform_indices = @transform_2, window_bounds = array<i64: 1, 8, 128>}, {transform_indices = @transform_3, window_bounds = array<i64: 1, 1, 1, 128>}, {transform_indices = @transform_4, window_bounds = array<i64: 1, 1, 1, 128>}]} {
    %c0 = arith.constant 0 : index
    %c0_0 = arith.constant 0 : index
    %0 = vector.load %arg2[%c0, %c0_0] : memref<8x256xbf16, #tpu.memory_space<vmem>>, vector<8x256xbf16>
    %c0_1 = arith.constant 0 : index
    %c0_2 = arith.constant 0 : index
    %c0_3 = arith.constant 0 : index
    %1 = vector.load %arg3[%c0_1, %c0_2, %c0_3] : memref<1x256x128xbf16, #tpu.memory_space<vmem>>, vector<1x256x128xbf16>
    %2 = vector.shape_cast %1 : vector<1x256x128xbf16> to vector<256x128xbf16>
    %cst = arith.constant dense<0.000000e+00> : vector<8x128xf32>
    %3 = tpu.matmul %0, %2, %cst {dimension_numbers = #tpu.dot_dimension_numbers<[1], [0], [0], [1], [0, 0, 1, 1], [], []>} : vector<8x256xbf16>, vector<256x128xbf16>, vector<8x128xf32> -> vector<8x128xf32>
    %4 = arith.truncf %3 : vector<8x128xf32> to vector<8x128xbf16>
    %c0_4 = arith.constant 0 : index
    %c0_5 = arith.constant 0 : index
    %c0_6 = arith.constant 0 : index
    %5 = vector.load %arg4[%c0_4, %c0_5, %c0_6] : memref<1x8x128xbf16, #tpu.memory_space<vmem>>, vector<1x8x128xbf16>
    %6 = vector.shape_cast %5 : vector<1x8x128xbf16> to vector<8x128xbf16>
    %7 = vector.shape_cast %4 : vector<8x128xbf16> to vector<1x8x128xbf16>
    tpu.vector_store %arg4[%c0_4, %c0_5, %c0_6], %7 {strides = array<i32>} : memref<1x8x128xbf16, #tpu.memory_space<vmem>>, vector<1x8x128xbf16>,
    %cst_7 = arith.constant dense<0.000000e+00> : vector<128xf32>
    %8 = vector.multi_reduction <add>, %3, %cst_7 [0] : vector<8x128xf32> to vector<128xf32>
    %9 = vector.shape_cast %8 : vector<128xf32> to vector<1x128xf32>
    %c0_8 = arith.constant 0 : index
    %c0_9 = arith.constant 0 : index
    %c0_10 = arith.constant 0 : index
    %c0_11 = arith.constant 0 : index
    %10 = vector.load %arg5[%c0_8, %c0_9, %c0_10, %c0_11] : memref<1x1x1x128xf32, #tpu.memory_space<vmem>>, vector<1x1x1x128xf32>
    %11 = vector.shape_cast %10 : vector<1x1x1x128xf32> to vector<1x128xf32>
    %12 = vector.shape_cast %9 : vector<1x128xf32> to vector<1x1x1x128xf32>
    tpu.vector_store %arg5[%c0_8, %c0_9, %c0_10, %c0_11], %12 {strides = array<i32>} : memref<1x1x1x128xf32, #tpu.memory_space<vmem>>, vector<1x1x1x128xf32>,
    %13 = arith.mulf %3, %3 : vector<8x128xf32>
    %cst_12 = arith.constant dense<0.000000e+00> : vector<128xf32>
    %14 = vector.multi_reduction <add>, %13, %cst_12 [0] : vector<8x128xf32> to vector<128xf32>
    %15 = vector.shape_cast %14 : vector<128xf32> to vector<1x128xf32>
    %c0_13 = arith.constant 0 : index
    %c0_14 = arith.constant 0 : index
    %c0_15 = arith.constant 0 : index
    %c0_16 = arith.constant 0 : index
    %16 = vector.load %arg6[%c0_13, %c0_14, %c0_15, %c0_16] : memref<1x1x1x128xf32, #tpu.memory_space<vmem>>, vector<1x1x1x128xf32>
    %17 = vector.shape_cast %16 : vector<1x1x1x128xf32> to vector<1x128xf32>
    %18 = vector.shape_cast %15 : vector<1x128xf32> to vector<1x1x1x128xf32>
    tpu.vector_store %arg6[%c0_13, %c0_14, %c0_15, %c0_16], %18 {strides = array<i32>} : memref<1x1x1x128xf32, #tpu.memory_space<vmem>>, vector<1x1x1x128xf32>,
    return
  }
  func.func @transform_0(%arg0: i32, %arg1: i32) -> (i32, i32) {
    %c0_i32 = arith.constant 0 : i32
    %c0_i32_0 = arith.constant 0 : i32
    return %arg0, %c0_i32 : i32, i32
  }
  func.func @transform_1(%arg0: i32, %arg1: i32) -> (i32, i32, i32) {
    %c0_i32 = arith.constant 0 : i32
    %c0_i32_0 = arith.constant 0 : i32
    %c0_i32_1 = arith.constant 0 : i32
    return %arg1, %c0_i32, %c0_i32_0 : i32, i32, i32
  }
  func.func @transform_2(%arg0: i32, %arg1: i32) -> (i32, i32, i32) {
    %c0_i32 = arith.constant 0 : i32
    %c0_i32_0 = arith.constant 0 : i32
    return %arg1, %arg0, %c0_i32 : i32, i32, i32
  }
  func.func @transform_3(%arg0: i32, %arg1: i32) -> (i32, i32, i32, i32) {
    %c0_i32 = arith.constant 0 : i32
    %c0_i32_0 = arith.constant 0 : i32
    %c0_i32_1 = arith.constant 0 : i32
    return %arg1, %arg0, %c0_i32, %c0_i32_0 : i32, i32, i32, i32
  }
  func.func @transform_4(%arg0: i32, %arg1: i32) -> (i32, i32, i32, i32) {
    %c0_i32 = arith.constant 0 : i32
    %c0_i32_0 = arith.constant 0 : i32
    %c0_i32_1 = arith.constant 0 : i32
    return %arg1, %arg0, %c0_i32, %c0_i32_0 : i32, i32, i32, i32
  }
}

module attributes {stable_mosaic.version = 11 : i64} {
  func.func @_scale_shift_relu_kernel(%arg0: i32, %arg1: i32, %arg2: memref<1x8x128xbf16, #tpu.memory_space<vmem>>, %arg3: memref<1x128xf32, #tpu.memory_space<vmem>>, %arg4: memref<1x128xf32, #tpu.memory_space<vmem>>, %arg5: memref<1x8x128xbf16, #tpu.memory_space<vmem>>) attributes {dimension_semantics = [#tpu.dimension_semantics<parallel>, #tpu.dimension_semantics<parallel>], iteration_bounds = array<i64: 1, 1>, scalar_prefetch = 0 : i64, scratch_operands = 0 : i64, tpu.core_type = #tpu.core_type<tc>, window_params = [{transform_indices = @transform_0, window_bounds = array<i64: 1, 8, 128>}, {pipeline_mode = #tpu.pipeline_mode<synchronous>, transform_indices = @transform_1, window_bounds = array<i64: 1, 128>}, {pipeline_mode = #tpu.pipeline_mode<synchronous>, transform_indices = @transform_2, window_bounds = array<i64: 1, 128>}, {transform_indices = @transform_3, window_bounds = array<i64: 1, 8, 128>}]} {
    %c0 = arith.constant 0 : index
    %c0_0 = arith.constant 0 : index
    %c0_1 = arith.constant 0 : index
    %0 = vector.load %arg2[%c0, %c0_0, %c0_1] : memref<1x8x128xbf16, #tpu.memory_space<vmem>>, vector<1x8x128xbf16>
    %1 = vector.shape_cast %0 : vector<1x8x128xbf16> to vector<8x128xbf16>
    %2 = arith.extf %1 : vector<8x128xbf16> to vector<8x128xf32>
    %c0_2 = arith.constant 0 : index
    %c0_3 = arith.constant 0 : index
    %3 = vector.load %arg3[%c0_2, %c0_3] : memref<1x128xf32, #tpu.memory_space<vmem>>, vector<1x128xf32>
    %4 = vector.broadcast %3 : vector<1x128xf32> to vector<8x128xf32>
    %5 = arith.mulf %2, %4 : vector<8x128xf32>
    %c0_4 = arith.constant 0 : index
    %c0_5 = arith.constant 0 : index
    %6 = vector.load %arg4[%c0_4, %c0_5] : memref<1x128xf32, #tpu.memory_space<vmem>>, vector<1x128xf32>
    %7 = vector.broadcast %6 : vector<1x128xf32> to vector<8x128xf32>
    %8 = arith.addf %5, %7 : vector<8x128xf32>
    %cst = arith.constant 0.000000e+00 : f32
    %9 = vector.broadcast %cst : f32 to vector<8x128xf32>
    %10 = arith.maximumf %8, %9 : vector<8x128xf32>
    %11 = arith.truncf %10 : vector<8x128xf32> to vector<8x128xbf16>
    %c0_6 = arith.constant 0 : index
    %c0_7 = arith.constant 0 : index
    %c0_8 = arith.constant 0 : index
    %12 = vector.load %arg5[%c0_6, %c0_7, %c0_8] : memref<1x8x128xbf16, #tpu.memory_space<vmem>>, vector<1x8x128xbf16>
    %13 = vector.shape_cast %12 : vector<1x8x128xbf16> to vector<8x128xbf16>
    %14 = vector.shape_cast %11 : vector<8x128xbf16> to vector<1x8x128xbf16>
    tpu.vector_store %arg5[%c0_6, %c0_7, %c0_8], %14 {strides = array<i32>} : memref<1x8x128xbf16, #tpu.memory_space<vmem>>, vector<1x8x128xbf16>,
    return
  }
  func.func @transform_0(%arg0: i32, %arg1: i32) -> (i32, i32, i32) {
    %c0_i32 = arith.constant 0 : i32
    %c0_i32_0 = arith.constant 0 : i32
    return %arg1, %arg0, %c0_i32 : i32, i32, i32
  }
  func.func @transform_1(%arg0: i32, %arg1: i32) -> (i32, i32) {
    %c0_i32 = arith.constant 0 : i32
    %c0_i32_0 = arith.constant 0 : i32
    %c0_i32_1 = arith.constant 0 : i32
    return %c0_i32, %c0_i32_0 : i32, i32
  }
  func.func @transform_2(%arg0: i32, %arg1: i32) -> (i32, i32) {
    %c0_i32 = arith.constant 0 : i32
    %c0_i32_0 = arith.constant 0 : i32
    %c0_i32_1 = arith.constant 0 : i32
    return %c0_i32, %c0_i32_0 : i32, i32
  }
  func.func @transform_3(%arg0: i32, %arg1: i32) -> (i32, i32, i32) {
    %c0_i32 = arith.constant 0 : i32
    %c0_i32_0 = arith.constant 0 : i32
    return %arg1, %arg0, %c0_i32 : i32, i32, i32
  }
}

module attributes {stable_mosaic.version = 11 : i64} {
  func.func @_gemm_bias_kernel(%arg0: i32, %arg1: i32, %arg2: memref<2x512xbf16, #tpu.memory_space<vmem>>, %arg3: memref<1x512x128xbf16, #tpu.memory_space<vmem>>, %arg4: memref<1x128xf32, #tpu.memory_space<vmem>>, %arg5: memref<1x2x128xbf16, #tpu.memory_space<vmem>>) attributes {dimension_semantics = [#tpu.dimension_semantics<parallel>, #tpu.dimension_semantics<parallel>], iteration_bounds = array<i64: 1, 1>, scalar_prefetch = 0 : i64, scratch_operands = 0 : i64, tpu.core_type = #tpu.core_type<tc>, window_params = [{transform_indices = @transform_0, window_bounds = array<i64: 2, 512>}, {transform_indices = @transform_1, window_bounds = array<i64: 1, 512, 128>}, {pipeline_mode = #tpu.pipeline_mode<synchronous>, transform_indices = @transform_2, window_bounds = array<i64: 1, 128>}, {transform_indices = @transform_3, window_bounds = array<i64: 1, 2, 128>}]} {
    %c0 = arith.constant 0 : index
    %c0_0 = arith.constant 0 : index
    %0 = vector.load %arg2[%c0, %c0_0] : memref<2x512xbf16, #tpu.memory_space<vmem>>, vector<2x512xbf16>
    %c0_1 = arith.constant 0 : index
    %c0_2 = arith.constant 0 : index
    %c0_3 = arith.constant 0 : index
    %1 = vector.load %arg3[%c0_1, %c0_2, %c0_3] : memref<1x512x128xbf16, #tpu.memory_space<vmem>>, vector<1x512x128xbf16>
    %2 = vector.shape_cast %1 : vector<1x512x128xbf16> to vector<512x128xbf16>
    %cst = arith.constant dense<0.000000e+00> : vector<2x128xf32>
    %3 = tpu.matmul %0, %2, %cst {dimension_numbers = #tpu.dot_dimension_numbers<[1], [0], [0], [1], [0, 0, 1, 1], [], []>} : vector<2x512xbf16>, vector<512x128xbf16>, vector<2x128xf32> -> vector<2x128xf32>
    %c0_4 = arith.constant 0 : index
    %c0_5 = arith.constant 0 : index
    %4 = vector.load %arg4[%c0_4, %c0_5] : memref<1x128xf32, #tpu.memory_space<vmem>>, vector<1x128xf32>
    %5 = vector.broadcast %4 : vector<1x128xf32> to vector<2x128xf32>
    %6 = arith.addf %3, %5 : vector<2x128xf32>
    %7 = arith.truncf %6 : vector<2x128xf32> to vector<2x128xbf16>
    %c0_6 = arith.constant 0 : index
    %c0_7 = arith.constant 0 : index
    %c0_8 = arith.constant 0 : index
    %8 = vector.load %arg5[%c0_6, %c0_7, %c0_8] : memref<1x2x128xbf16, #tpu.memory_space<vmem>>, vector<1x2x128xbf16>
    %9 = vector.shape_cast %8 : vector<1x2x128xbf16> to vector<2x128xbf16>
    %10 = vector.shape_cast %7 : vector<2x128xbf16> to vector<1x2x128xbf16>
    tpu.vector_store %arg5[%c0_6, %c0_7, %c0_8], %10 {strides = array<i32>} : memref<1x2x128xbf16, #tpu.memory_space<vmem>>, vector<1x2x128xbf16>,
    return
  }
  func.func @transform_0(%arg0: i32, %arg1: i32) -> (i32, i32) {
    %c0_i32 = arith.constant 0 : i32
    %c0_i32_0 = arith.constant 0 : i32
    return %arg0, %c0_i32 : i32, i32
  }
  func.func @transform_1(%arg0: i32, %arg1: i32) -> (i32, i32, i32) {
    %c0_i32 = arith.constant 0 : i32
    %c0_i32_0 = arith.constant 0 : i32
    %c0_i32_1 = arith.constant 0 : i32
    return %arg1, %c0_i32, %c0_i32_0 : i32, i32, i32
  }
  func.func @transform_2(%arg0: i32, %arg1: i32) -> (i32, i32) {
    %c0_i32 = arith.constant 0 : i32
    %c0_i32_0 = arith.constant 0 : i32
    %c0_i32_1 = arith.constant 0 : i32
    return %c0_i32, %c0_i32_0 : i32, i32
  }
  func.func @transform_3(%arg0: i32, %arg1: i32) -> (i32, i32, i32) {
    %c0_i32 = arith.constant 0 : i32
    %c0_i32_0 = arith.constant 0 : i32
    return %arg1, %arg0, %c0_i32 : i32, i32, i32
  }
}

module attributes {stable_mosaic.version = 11 : i64} {
  func.func @_gemm_stats_kernel(%arg0: i32, %arg1: i32, %arg2: memref<2x576xbf16, #tpu.memory_space<vmem>>, %arg3: memref<1x576x128xbf16, #tpu.memory_space<vmem>>, %arg4: memref<1x2x128xbf16, #tpu.memory_space<vmem>>, %arg5: memref<1x1x1x128xf32, #tpu.memory_space<vmem>>, %arg6: memref<1x1x1x128xf32, #tpu.memory_space<vmem>>) attributes {dimension_semantics = [#tpu.dimension_semantics<parallel>, #tpu.dimension_semantics<parallel>], iteration_bounds = array<i64: 1, 4>, scalar_prefetch = 0 : i64, scratch_operands = 0 : i64, tpu.core_type = #tpu.core_type<tc>, window_params = [{transform_indices = @transform_0, window_bounds = array<i64: 2, 576>}, {transform_indices = @transform_1, window_bounds = array<i64: 1, 576, 128>}, {transform_indices = @transform_2, window_bounds = array<i64: 1, 2, 128>}, {transform_indices = @transform_3, window_bounds = array<i64: 1, 1, 1, 128>}, {transform_indices = @transform_4, window_bounds = array<i64: 1, 1, 1, 128>}]} {
    %c0 = arith.constant 0 : index
    %c0_0 = arith.constant 0 : index
    %0 = vector.load %arg2[%c0, %c0_0] : memref<2x576xbf16, #tpu.memory_space<vmem>>, vector<2x576xbf16>
    %c0_1 = arith.constant 0 : index
    %c0_2 = arith.constant 0 : index
    %c0_3 = arith.constant 0 : index
    %1 = vector.load %arg3[%c0_1, %c0_2, %c0_3] : memref<1x576x128xbf16, #tpu.memory_space<vmem>>, vector<1x576x128xbf16>
    %2 = vector.shape_cast %1 : vector<1x576x128xbf16> to vector<576x128xbf16>
    %cst = arith.constant dense<0.000000e+00> : vector<2x128xf32>
    %3 = tpu.matmul %0, %2, %cst {dimension_numbers = #tpu.dot_dimension_numbers<[1], [0], [0], [1], [0, 0, 1, 1], [], []>} : vector<2x576xbf16>, vector<576x128xbf16>, vector<2x128xf32> -> vector<2x128xf32>
    %4 = arith.truncf %3 : vector<2x128xf32> to vector<2x128xbf16>
    %c0_4 = arith.constant 0 : index
    %c0_5 = arith.constant 0 : index
    %c0_6 = arith.constant 0 : index
    %5 = vector.load %arg4[%c0_4, %c0_5, %c0_6] : memref<1x2x128xbf16, #tpu.memory_space<vmem>>, vector<1x2x128xbf16>
    %6 = vector.shape_cast %5 : vector<1x2x128xbf16> to vector<2x128xbf16>
    %7 = vector.shape_cast %4 : vector<2x128xbf16> to vector<1x2x128xbf16>
    tpu.vector_store %arg4[%c0_4, %c0_5, %c0_6], %7 {strides = array<i32>} : memref<1x2x128xbf16, #tpu.memory_space<vmem>>, vector<1x2x128xbf16>,
    %cst_7 = arith.constant dense<0.000000e+00> : vector<128xf32>
    %8 = vector.multi_reduction <add>, %3, %cst_7 [0] : vector<2x128xf32> to vector<128xf32>
    %9 = vector.shape_cast %8 : vector<128xf32> to vector<1x128xf32>
    %c0_8 = arith.constant 0 : index
    %c0_9 = arith.constant 0 : index
    %c0_10 = arith.constant 0 : index
    %c0_11 = arith.constant 0 : index
    %10 = vector.load %arg5[%c0_8, %c0_9, %c0_10, %c0_11] : memref<1x1x1x128xf32, #tpu.memory_space<vmem>>, vector<1x1x1x128xf32>
    %11 = vector.shape_cast %10 : vector<1x1x1x128xf32> to vector<1x128xf32>
    %12 = vector.shape_cast %9 : vector<1x128xf32> to vector<1x1x1x128xf32>
    tpu.vector_store %arg5[%c0_8, %c0_9, %c0_10, %c0_11], %12 {strides = array<i32>} : memref<1x1x1x128xf32, #tpu.memory_space<vmem>>, vector<1x1x1x128xf32>,
    %13 = arith.mulf %3, %3 : vector<2x128xf32>
    %cst_12 = arith.constant dense<0.000000e+00> : vector<128xf32>
    %14 = vector.multi_reduction <add>, %13, %cst_12 [0] : vector<2x128xf32> to vector<128xf32>
    %15 = vector.shape_cast %14 : vector<128xf32> to vector<1x128xf32>
    %c0_13 = arith.constant 0 : index
    %c0_14 = arith.constant 0 : index
    %c0_15 = arith.constant 0 : index
    %c0_16 = arith.constant 0 : index
    %16 = vector.load %arg6[%c0_13, %c0_14, %c0_15, %c0_16] : memref<1x1x1x128xf32, #tpu.memory_space<vmem>>, vector<1x1x1x128xf32>
    %17 = vector.shape_cast %16 : vector<1x1x1x128xf32> to vector<1x128xf32>
    %18 = vector.shape_cast %15 : vector<1x128xf32> to vector<1x1x1x128xf32>
    tpu.vector_store %arg6[%c0_13, %c0_14, %c0_15, %c0_16], %18 {strides = array<i32>} : memref<1x1x1x128xf32, #tpu.memory_space<vmem>>, vector<1x1x1x128xf32>,
    return
  }
  func.func @transform_0(%arg0: i32, %arg1: i32) -> (i32, i32) {
    %c0_i32 = arith.constant 0 : i32
    %c0_i32_0 = arith.constant 0 : i32
    return %arg0, %c0_i32 : i32, i32
  }
  func.func @transform_1(%arg0: i32, %arg1: i32) -> (i32, i32, i32) {
    %c0_i32 = arith.constant 0 : i32
    %c0_i32_0 = arith.constant 0 : i32
    %c0_i32_1 = arith.constant 0 : i32
    return %arg1, %c0_i32, %c0_i32_0 : i32, i32, i32
  }
  func.func @transform_2(%arg0: i32, %arg1: i32) -> (i32, i32, i32) {
    %c0_i32 = arith.constant 0 : i32
    %c0_i32_0 = arith.constant 0 : i32
    return %arg1, %arg0, %c0_i32 : i32, i32, i32
  }
  func.func @transform_3(%arg0: i32, %arg1: i32) -> (i32, i32, i32, i32) {
    %c0_i32 = arith.constant 0 : i32
    %c0_i32_0 = arith.constant 0 : i32
    %c0_i32_1 = arith.constant 0 : i32
    return %arg1, %arg0, %c0_i32, %c0_i32_0 : i32, i32, i32, i32
  }
  func.func @transform_4(%arg0: i32, %arg1: i32) -> (i32, i32, i32, i32) {
    %c0_i32 = arith.constant 0 : i32
    %c0_i32_0 = arith.constant 0 : i32
    %c0_i32_1 = arith.constant 0 : i32
    return %arg1, %arg0, %c0_i32, %c0_i32_0 : i32, i32, i32, i32
  }
}

module attributes {stable_mosaic.version = 11 : i64} {
  func.func @_scale_shift_relu_kernel(%arg0: i32, %arg1: i32, %arg2: memref<1x2x128xbf16, #tpu.memory_space<vmem>>, %arg3: memref<1x128xf32, #tpu.memory_space<vmem>>, %arg4: memref<1x128xf32, #tpu.memory_space<vmem>>, %arg5: memref<1x2x128xbf16, #tpu.memory_space<vmem>>) attributes {dimension_semantics = [#tpu.dimension_semantics<parallel>, #tpu.dimension_semantics<parallel>], iteration_bounds = array<i64: 1, 4>, scalar_prefetch = 0 : i64, scratch_operands = 0 : i64, tpu.core_type = #tpu.core_type<tc>, window_params = [{transform_indices = @transform_0, window_bounds = array<i64: 1, 2, 128>}, {pipeline_mode = #tpu.pipeline_mode<synchronous>, transform_indices = @transform_1, window_bounds = array<i64: 1, 128>}, {pipeline_mode = #tpu.pipeline_mode<synchronous>, transform_indices = @transform_2, window_bounds = array<i64: 1, 128>}, {transform_indices = @transform_3, window_bounds = array<i64: 1, 2, 128>}]} {
    %c0 = arith.constant 0 : index
    %c0_0 = arith.constant 0 : index
    %c0_1 = arith.constant 0 : index
    %0 = vector.load %arg2[%c0, %c0_0, %c0_1] : memref<1x2x128xbf16, #tpu.memory_space<vmem>>, vector<1x2x128xbf16>
    %1 = vector.shape_cast %0 : vector<1x2x128xbf16> to vector<2x128xbf16>
    %2 = arith.extf %1 : vector<2x128xbf16> to vector<2x128xf32>
    %c0_2 = arith.constant 0 : index
    %c0_3 = arith.constant 0 : index
    %3 = vector.load %arg3[%c0_2, %c0_3] : memref<1x128xf32, #tpu.memory_space<vmem>>, vector<1x128xf32>
    %4 = vector.broadcast %3 : vector<1x128xf32> to vector<2x128xf32>
    %5 = arith.mulf %2, %4 : vector<2x128xf32>
    %c0_4 = arith.constant 0 : index
    %c0_5 = arith.constant 0 : index
    %6 = vector.load %arg4[%c0_4, %c0_5] : memref<1x128xf32, #tpu.memory_space<vmem>>, vector<1x128xf32>
    %7 = vector.broadcast %6 : vector<1x128xf32> to vector<2x128xf32>
    %8 = arith.addf %5, %7 : vector<2x128xf32>
    %cst = arith.constant 0.000000e+00 : f32
    %9 = vector.broadcast %cst : f32 to vector<2x128xf32>
    %10 = arith.maximumf %8, %9 : vector<2x128xf32>
    %11 = arith.truncf %10 : vector<2x128xf32> to vector<2x128xbf16>
    %c0_6 = arith.constant 0 : index
    %c0_7 = arith.constant 0 : index
    %c0_8 = arith.constant 0 : index
    %12 = vector.load %arg5[%c0_6, %c0_7, %c0_8] : memref<1x2x128xbf16, #tpu.memory_space<vmem>>, vector<1x2x128xbf16>
    %13 = vector.shape_cast %12 : vector<1x2x128xbf16> to vector<2x128xbf16>
    %14 = vector.shape_cast %11 : vector<2x128xbf16> to vector<1x2x128xbf16>
    tpu.vector_store %arg5[%c0_6, %c0_7, %c0_8], %14 {strides = array<i32>} : memref<1x2x128xbf16, #tpu.memory_space<vmem>>, vector<1x2x128xbf16>,
    return
  }
  func.func @transform_0(%arg0: i32, %arg1: i32) -> (i32, i32, i32) {
    %c0_i32 = arith.constant 0 : i32
    %c0_i32_0 = arith.constant 0 : i32
    return %arg1, %arg0, %c0_i32 : i32, i32, i32
  }
  func.func @transform_1(%arg0: i32, %arg1: i32) -> (i32, i32) {
    %c0_i32 = arith.constant 0 : i32
    %c0_i32_0 = arith.constant 0 : i32
    %c0_i32_1 = arith.constant 0 : i32
    return %c0_i32, %c0_i32_0 : i32, i32
  }
  func.func @transform_2(%arg0: i32, %arg1: i32) -> (i32, i32) {
    %c0_i32 = arith.constant 0 : i32
    %c0_i32_0 = arith.constant 0 : i32
    %c0_i32_1 = arith.constant 0 : i32
    return %c0_i32, %c0_i32_0 : i32, i32
  }
  func.func @transform_3(%arg0: i32, %arg1: i32) -> (i32, i32, i32) {
    %c0_i32 = arith.constant 0 : i32
    %c0_i32_0 = arith.constant 0 : i32
    return %arg1, %arg0, %c0_i32 : i32, i32, i32
  }
}

module attributes {stable_mosaic.version = 11 : i64} {
  func.func @_scale_shift_relu_kernel(%arg0: i32, %arg1: i32, %arg2: memref<1x8x128xbf16, #tpu.memory_space<vmem>>, %arg3: memref<1x128xf32, #tpu.memory_space<vmem>>, %arg4: memref<1x128xf32, #tpu.memory_space<vmem>>, %arg5: memref<1x8x128xbf16, #tpu.memory_space<vmem>>) attributes {dimension_semantics = [#tpu.dimension_semantics<parallel>, #tpu.dimension_semantics<parallel>], iteration_bounds = array<i64: 1, 4>, scalar_prefetch = 0 : i64, scratch_operands = 0 : i64, tpu.core_type = #tpu.core_type<tc>, window_params = [{transform_indices = @transform_0, window_bounds = array<i64: 1, 8, 128>}, {pipeline_mode = #tpu.pipeline_mode<synchronous>, transform_indices = @transform_1, window_bounds = array<i64: 1, 128>}, {pipeline_mode = #tpu.pipeline_mode<synchronous>, transform_indices = @transform_2, window_bounds = array<i64: 1, 128>}, {transform_indices = @transform_3, window_bounds = array<i64: 1, 8, 128>}]} {
    %c0 = arith.constant 0 : index
    %c0_0 = arith.constant 0 : index
    %c0_1 = arith.constant 0 : index
    %0 = vector.load %arg2[%c0, %c0_0, %c0_1] : memref<1x8x128xbf16, #tpu.memory_space<vmem>>, vector<1x8x128xbf16>
    %1 = vector.shape_cast %0 : vector<1x8x128xbf16> to vector<8x128xbf16>
    %2 = arith.extf %1 : vector<8x128xbf16> to vector<8x128xf32>
    %c0_2 = arith.constant 0 : index
    %c0_3 = arith.constant 0 : index
    %3 = vector.load %arg3[%c0_2, %c0_3] : memref<1x128xf32, #tpu.memory_space<vmem>>, vector<1x128xf32>
    %4 = vector.broadcast %3 : vector<1x128xf32> to vector<8x128xf32>
    %5 = arith.mulf %2, %4 : vector<8x128xf32>
    %c0_4 = arith.constant 0 : index
    %c0_5 = arith.constant 0 : index
    %6 = vector.load %arg4[%c0_4, %c0_5] : memref<1x128xf32, #tpu.memory_space<vmem>>, vector<1x128xf32>
    %7 = vector.broadcast %6 : vector<1x128xf32> to vector<8x128xf32>
    %8 = arith.addf %5, %7 : vector<8x128xf32>
    %cst = arith.constant 0.000000e+00 : f32
    %9 = vector.broadcast %cst : f32 to vector<8x128xf32>
    %10 = arith.maximumf %8, %9 : vector<8x128xf32>
    %11 = arith.truncf %10 : vector<8x128xf32> to vector<8x128xbf16>
    %c0_6 = arith.constant 0 : index
    %c0_7 = arith.constant 0 : index
    %c0_8 = arith.constant 0 : index
    %12 = vector.load %arg5[%c0_6, %c0_7, %c0_8] : memref<1x8x128xbf16, #tpu.memory_space<vmem>>, vector<1x8x128xbf16>
    %13 = vector.shape_cast %12 : vector<1x8x128xbf16> to vector<8x128xbf16>
    %14 = vector.shape_cast %11 : vector<8x128xbf16> to vector<1x8x128xbf16>
    tpu.vector_store %arg5[%c0_6, %c0_7, %c0_8], %14 {strides = array<i32>} : memref<1x8x128xbf16, #tpu.memory_space<vmem>>, vector<1x8x128xbf16>,
    return
  }
  func.func @transform_0(%arg0: i32, %arg1: i32) -> (i32, i32, i32) {
    %c0_i32 = arith.constant 0 : i32
    %c0_i32_0 = arith.constant 0 : i32
    return %arg1, %arg0, %c0_i32 : i32, i32, i32
  }
  func.func @transform_1(%arg0: i32, %arg1: i32) -> (i32, i32) {
    %c0_i32 = arith.constant 0 : i32
    %c0_i32_0 = arith.constant 0 : i32
    %c0_i32_1 = arith.constant 0 : i32
    return %c0_i32, %c0_i32_0 : i32, i32
  }
  func.func @transform_2(%arg0: i32, %arg1: i32) -> (i32, i32) {
    %c0_i32 = arith.constant 0 : i32
    %c0_i32_0 = arith.constant 0 : i32
    %c0_i32_1 = arith.constant 0 : i32
    return %c0_i32, %c0_i32_0 : i32, i32
  }
  func.func @transform_3(%arg0: i32, %arg1: i32) -> (i32, i32, i32) {
    %c0_i32 = arith.constant 0 : i32
    %c0_i32_0 = arith.constant 0 : i32
    return %arg1, %arg0, %c0_i32 : i32, i32, i32
  }
}

module attributes {stable_mosaic.version = 11 : i64} {
  func.func @_gemm_stats_kernel(%arg0: i32, %arg1: i32, %arg2: memref<8x288xbf16, #tpu.memory_space<vmem>>, %arg3: memref<1x288x128xbf16, #tpu.memory_space<vmem>>, %arg4: memref<1x8x128xbf16, #tpu.memory_space<vmem>>, %arg5: memref<1x1x1x128xf32, #tpu.memory_space<vmem>>, %arg6: memref<1x1x1x128xf32, #tpu.memory_space<vmem>>) attributes {dimension_semantics = [#tpu.dimension_semantics<parallel>, #tpu.dimension_semantics<parallel>], iteration_bounds = array<i64: 1, 4>, scalar_prefetch = 0 : i64, scratch_operands = 0 : i64, tpu.core_type = #tpu.core_type<tc>, window_params = [{transform_indices = @transform_0, window_bounds = array<i64: 8, 288>}, {transform_indices = @transform_1, window_bounds = array<i64: 1, 288, 128>}, {transform_indices = @transform_2, window_bounds = array<i64: 1, 8, 128>}, {transform_indices = @transform_3, window_bounds = array<i64: 1, 1, 1, 128>}, {transform_indices = @transform_4, window_bounds = array<i64: 1, 1, 1, 128>}]} {
    %c0 = arith.constant 0 : index
    %c0_0 = arith.constant 0 : index
    %0 = vector.load %arg2[%c0, %c0_0] : memref<8x288xbf16, #tpu.memory_space<vmem>>, vector<8x288xbf16>
    %c0_1 = arith.constant 0 : index
    %c0_2 = arith.constant 0 : index
    %c0_3 = arith.constant 0 : index
    %1 = vector.load %arg3[%c0_1, %c0_2, %c0_3] : memref<1x288x128xbf16, #tpu.memory_space<vmem>>, vector<1x288x128xbf16>
    %2 = vector.shape_cast %1 : vector<1x288x128xbf16> to vector<288x128xbf16>
    %cst = arith.constant dense<0.000000e+00> : vector<8x128xf32>
    %3 = tpu.matmul %0, %2, %cst {dimension_numbers = #tpu.dot_dimension_numbers<[1], [0], [0], [1], [0, 0, 1, 1], [], []>} : vector<8x288xbf16>, vector<288x128xbf16>, vector<8x128xf32> -> vector<8x128xf32>
    %4 = arith.truncf %3 : vector<8x128xf32> to vector<8x128xbf16>
    %c0_4 = arith.constant 0 : index
    %c0_5 = arith.constant 0 : index
    %c0_6 = arith.constant 0 : index
    %5 = vector.load %arg4[%c0_4, %c0_5, %c0_6] : memref<1x8x128xbf16, #tpu.memory_space<vmem>>, vector<1x8x128xbf16>
    %6 = vector.shape_cast %5 : vector<1x8x128xbf16> to vector<8x128xbf16>
    %7 = vector.shape_cast %4 : vector<8x128xbf16> to vector<1x8x128xbf16>
    tpu.vector_store %arg4[%c0_4, %c0_5, %c0_6], %7 {strides = array<i32>} : memref<1x8x128xbf16, #tpu.memory_space<vmem>>, vector<1x8x128xbf16>,
    %cst_7 = arith.constant dense<0.000000e+00> : vector<128xf32>
    %8 = vector.multi_reduction <add>, %3, %cst_7 [0] : vector<8x128xf32> to vector<128xf32>
    %9 = vector.shape_cast %8 : vector<128xf32> to vector<1x128xf32>
    %c0_8 = arith.constant 0 : index
    %c0_9 = arith.constant 0 : index
    %c0_10 = arith.constant 0 : index
    %c0_11 = arith.constant 0 : index
    %10 = vector.load %arg5[%c0_8, %c0_9, %c0_10, %c0_11] : memref<1x1x1x128xf32, #tpu.memory_space<vmem>>, vector<1x1x1x128xf32>
    %11 = vector.shape_cast %10 : vector<1x1x1x128xf32> to vector<1x128xf32>
    %12 = vector.shape_cast %9 : vector<1x128xf32> to vector<1x1x1x128xf32>
    tpu.vector_store %arg5[%c0_8, %c0_9, %c0_10, %c0_11], %12 {strides = array<i32>} : memref<1x1x1x128xf32, #tpu.memory_space<vmem>>, vector<1x1x1x128xf32>,
    %13 = arith.mulf %3, %3 : vector<8x128xf32>
    %cst_12 = arith.constant dense<0.000000e+00> : vector<128xf32>
    %14 = vector.multi_reduction <add>, %13, %cst_12 [0] : vector<8x128xf32> to vector<128xf32>
    %15 = vector.shape_cast %14 : vector<128xf32> to vector<1x128xf32>
    %c0_13 = arith.constant 0 : index
    %c0_14 = arith.constant 0 : index
    %c0_15 = arith.constant 0 : index
    %c0_16 = arith.constant 0 : index
    %16 = vector.load %arg6[%c0_13, %c0_14, %c0_15, %c0_16] : memref<1x1x1x128xf32, #tpu.memory_space<vmem>>, vector<1x1x1x128xf32>
    %17 = vector.shape_cast %16 : vector<1x1x1x128xf32> to vector<1x128xf32>
    %18 = vector.shape_cast %15 : vector<1x128xf32> to vector<1x1x1x128xf32>
    tpu.vector_store %arg6[%c0_13, %c0_14, %c0_15, %c0_16], %18 {strides = array<i32>} : memref<1x1x1x128xf32, #tpu.memory_space<vmem>>, vector<1x1x1x128xf32>,
    return
  }
  func.func @transform_0(%arg0: i32, %arg1: i32) -> (i32, i32) {
    %c0_i32 = arith.constant 0 : i32
    %c0_i32_0 = arith.constant 0 : i32
    return %arg0, %c0_i32 : i32, i32
  }
  func.func @transform_1(%arg0: i32, %arg1: i32) -> (i32, i32, i32) {
    %c0_i32 = arith.constant 0 : i32
    %c0_i32_0 = arith.constant 0 : i32
    %c0_i32_1 = arith.constant 0 : i32
    return %arg1, %c0_i32, %c0_i32_0 : i32, i32, i32
  }
  func.func @transform_2(%arg0: i32, %arg1: i32) -> (i32, i32, i32) {
    %c0_i32 = arith.constant 0 : i32
    %c0_i32_0 = arith.constant 0 : i32
    return %arg1, %arg0, %c0_i32 : i32, i32, i32
  }
  func.func @transform_3(%arg0: i32, %arg1: i32) -> (i32, i32, i32, i32) {
    %c0_i32 = arith.constant 0 : i32
    %c0_i32_0 = arith.constant 0 : i32
    %c0_i32_1 = arith.constant 0 : i32
    return %arg1, %arg0, %c0_i32, %c0_i32_0 : i32, i32, i32, i32
  }
  func.func @transform_4(%arg0: i32, %arg1: i32) -> (i32, i32, i32, i32) {
    %c0_i32 = arith.constant 0 : i32
    %c0_i32_0 = arith.constant 0 : i32
    %c0_i32_1 = arith.constant 0 : i32
    return %arg1, %arg0, %c0_i32, %c0_i32_0 : i32, i32, i32, i32
  }
}

module attributes {stable_mosaic.version = 11 : i64} {
  func.func @_scale_shift_relu_kernel(%arg0: i32, %arg1: i32, %arg2: memref<1x32x128xbf16, #tpu.memory_space<vmem>>, %arg3: memref<1x128xf32, #tpu.memory_space<vmem>>, %arg4: memref<1x128xf32, #tpu.memory_space<vmem>>, %arg5: memref<1x32x128xbf16, #tpu.memory_space<vmem>>) attributes {dimension_semantics = [#tpu.dimension_semantics<parallel>, #tpu.dimension_semantics<parallel>], iteration_bounds = array<i64: 1, 4>, scalar_prefetch = 0 : i64, scratch_operands = 0 : i64, tpu.core_type = #tpu.core_type<tc>, window_params = [{transform_indices = @transform_0, window_bounds = array<i64: 1, 32, 128>}, {pipeline_mode = #tpu.pipeline_mode<synchronous>, transform_indices = @transform_1, window_bounds = array<i64: 1, 128>}, {pipeline_mode = #tpu.pipeline_mode<synchronous>, transform_indices = @transform_2, window_bounds = array<i64: 1, 128>}, {transform_indices = @transform_3, window_bounds = array<i64: 1, 32, 128>}]} {
    %c0 = arith.constant 0 : index
    %c0_0 = arith.constant 0 : index
    %c0_1 = arith.constant 0 : index
    %0 = vector.load %arg2[%c0, %c0_0, %c0_1] : memref<1x32x128xbf16, #tpu.memory_space<vmem>>, vector<1x32x128xbf16>
    %1 = vector.shape_cast %0 : vector<1x32x128xbf16> to vector<32x128xbf16>
    %2 = arith.extf %1 : vector<32x128xbf16> to vector<32x128xf32>
    %c0_2 = arith.constant 0 : index
    %c0_3 = arith.constant 0 : index
    %3 = vector.load %arg3[%c0_2, %c0_3] : memref<1x128xf32, #tpu.memory_space<vmem>>, vector<1x128xf32>
    %4 = vector.broadcast %3 : vector<1x128xf32> to vector<32x128xf32>
    %5 = arith.mulf %2, %4 : vector<32x128xf32>
    %c0_4 = arith.constant 0 : index
    %c0_5 = arith.constant 0 : index
    %6 = vector.load %arg4[%c0_4, %c0_5] : memref<1x128xf32, #tpu.memory_space<vmem>>, vector<1x128xf32>
    %7 = vector.broadcast %6 : vector<1x128xf32> to vector<32x128xf32>
    %8 = arith.addf %5, %7 : vector<32x128xf32>
    %cst = arith.constant 0.000000e+00 : f32
    %9 = vector.broadcast %cst : f32 to vector<32x128xf32>
    %10 = arith.maximumf %8, %9 : vector<32x128xf32>
    %11 = arith.truncf %10 : vector<32x128xf32> to vector<32x128xbf16>
    %c0_6 = arith.constant 0 : index
    %c0_7 = arith.constant 0 : index
    %c0_8 = arith.constant 0 : index
    %12 = vector.load %arg5[%c0_6, %c0_7, %c0_8] : memref<1x32x128xbf16, #tpu.memory_space<vmem>>, vector<1x32x128xbf16>
    %13 = vector.shape_cast %12 : vector<1x32x128xbf16> to vector<32x128xbf16>
    %14 = vector.shape_cast %11 : vector<32x128xbf16> to vector<1x32x128xbf16>
    tpu.vector_store %arg5[%c0_6, %c0_7, %c0_8], %14 {strides = array<i32>} : memref<1x32x128xbf16, #tpu.memory_space<vmem>>, vector<1x32x128xbf16>,
    return
  }
  func.func @transform_0(%arg0: i32, %arg1: i32) -> (i32, i32, i32) {
    %c0_i32 = arith.constant 0 : i32
    %c0_i32_0 = arith.constant 0 : i32
    return %arg1, %arg0, %c0_i32 : i32, i32, i32
  }
  func.func @transform_1(%arg0: i32, %arg1: i32) -> (i32, i32) {
    %c0_i32 = arith.constant 0 : i32
    %c0_i32_0 = arith.constant 0 : i32
    %c0_i32_1 = arith.constant 0 : i32
    return %c0_i32, %c0_i32_0 : i32, i32
  }
  func.func @transform_2(%arg0: i32, %arg1: i32) -> (i32, i32) {
    %c0_i32 = arith.constant 0 : i32
    %c0_i32_0 = arith.constant 0 : i32
    %c0_i32_1 = arith.constant 0 : i32
    return %c0_i32, %c0_i32_0 : i32, i32
  }
  func.func @transform_3(%arg0: i32, %arg1: i32) -> (i32, i32, i32) {
    %c0_i32 = arith.constant 0 : i32
    %c0_i32_0 = arith.constant 0 : i32
    return %arg1, %arg0, %c0_i32 : i32, i32, i32
  }
}

module attributes {stable_mosaic.version = 11 : i64} {
  func.func @_gemm_stats_kernel(%arg0: i32, %arg1: i32, %arg2: memref<32x144xbf16, #tpu.memory_space<vmem>>, %arg3: memref<1x144x128xbf16, #tpu.memory_space<vmem>>, %arg4: memref<1x32x128xbf16, #tpu.memory_space<vmem>>, %arg5: memref<1x1x1x128xf32, #tpu.memory_space<vmem>>, %arg6: memref<1x1x1x128xf32, #tpu.memory_space<vmem>>) attributes {dimension_semantics = [#tpu.dimension_semantics<parallel>, #tpu.dimension_semantics<parallel>], iteration_bounds = array<i64: 1, 4>, scalar_prefetch = 0 : i64, scratch_operands = 0 : i64, tpu.core_type = #tpu.core_type<tc>, window_params = [{transform_indices = @transform_0, window_bounds = array<i64: 32, 144>}, {transform_indices = @transform_1, window_bounds = array<i64: 1, 144, 128>}, {transform_indices = @transform_2, window_bounds = array<i64: 1, 32, 128>}, {transform_indices = @transform_3, window_bounds = array<i64: 1, 1, 1, 128>}, {transform_indices = @transform_4, window_bounds = array<i64: 1, 1, 1, 128>}]} {
    %c0 = arith.constant 0 : index
    %c0_0 = arith.constant 0 : index
    %0 = vector.load %arg2[%c0, %c0_0] : memref<32x144xbf16, #tpu.memory_space<vmem>>, vector<32x144xbf16>
    %c0_1 = arith.constant 0 : index
    %c0_2 = arith.constant 0 : index
    %c0_3 = arith.constant 0 : index
    %1 = vector.load %arg3[%c0_1, %c0_2, %c0_3] : memref<1x144x128xbf16, #tpu.memory_space<vmem>>, vector<1x144x128xbf16>
    %2 = vector.shape_cast %1 : vector<1x144x128xbf16> to vector<144x128xbf16>
    %cst = arith.constant dense<0.000000e+00> : vector<32x128xf32>
    %3 = tpu.matmul %0, %2, %cst {dimension_numbers = #tpu.dot_dimension_numbers<[1], [0], [0], [1], [0, 0, 1, 1], [], []>} : vector<32x144xbf16>, vector<144x128xbf16>, vector<32x128xf32> -> vector<32x128xf32>
    %4 = arith.truncf %3 : vector<32x128xf32> to vector<32x128xbf16>
    %c0_4 = arith.constant 0 : index
    %c0_5 = arith.constant 0 : index
    %c0_6 = arith.constant 0 : index
    %5 = vector.load %arg4[%c0_4, %c0_5, %c0_6] : memref<1x32x128xbf16, #tpu.memory_space<vmem>>, vector<1x32x128xbf16>
    %6 = vector.shape_cast %5 : vector<1x32x128xbf16> to vector<32x128xbf16>
    %7 = vector.shape_cast %4 : vector<32x128xbf16> to vector<1x32x128xbf16>
    tpu.vector_store %arg4[%c0_4, %c0_5, %c0_6], %7 {strides = array<i32>} : memref<1x32x128xbf16, #tpu.memory_space<vmem>>, vector<1x32x128xbf16>,
    %cst_7 = arith.constant dense<0.000000e+00> : vector<128xf32>
    %8 = vector.multi_reduction <add>, %3, %cst_7 [0] : vector<32x128xf32> to vector<128xf32>
    %9 = vector.shape_cast %8 : vector<128xf32> to vector<1x128xf32>
    %c0_8 = arith.constant 0 : index
    %c0_9 = arith.constant 0 : index
    %c0_10 = arith.constant 0 : index
    %c0_11 = arith.constant 0 : index
    %10 = vector.load %arg5[%c0_8, %c0_9, %c0_10, %c0_11] : memref<1x1x1x128xf32, #tpu.memory_space<vmem>>, vector<1x1x1x128xf32>
    %11 = vector.shape_cast %10 : vector<1x1x1x128xf32> to vector<1x128xf32>
    %12 = vector.shape_cast %9 : vector<1x128xf32> to vector<1x1x1x128xf32>
    tpu.vector_store %arg5[%c0_8, %c0_9, %c0_10, %c0_11], %12 {strides = array<i32>} : memref<1x1x1x128xf32, #tpu.memory_space<vmem>>, vector<1x1x1x128xf32>,
    %13 = arith.mulf %3, %3 : vector<32x128xf32>
    %cst_12 = arith.constant dense<0.000000e+00> : vector<128xf32>
    %14 = vector.multi_reduction <add>, %13, %cst_12 [0] : vector<32x128xf32> to vector<128xf32>
    %15 = vector.shape_cast %14 : vector<128xf32> to vector<1x128xf32>
    %c0_13 = arith.constant 0 : index
    %c0_14 = arith.constant 0 : index
    %c0_15 = arith.constant 0 : index
    %c0_16 = arith.constant 0 : index
    %16 = vector.load %arg6[%c0_13, %c0_14, %c0_15, %c0_16] : memref<1x1x1x128xf32, #tpu.memory_space<vmem>>, vector<1x1x1x128xf32>
    %17 = vector.shape_cast %16 : vector<1x1x1x128xf32> to vector<1x128xf32>
    %18 = vector.shape_cast %15 : vector<1x128xf32> to vector<1x1x1x128xf32>
    tpu.vector_store %arg6[%c0_13, %c0_14, %c0_15, %c0_16], %18 {strides = array<i32>} : memref<1x1x1x128xf32, #tpu.memory_space<vmem>>, vector<1x1x1x128xf32>,
    return
  }
  func.func @transform_0(%arg0: i32, %arg1: i32) -> (i32, i32) {
    %c0_i32 = arith.constant 0 : i32
    %c0_i32_0 = arith.constant 0 : i32
    return %arg0, %c0_i32 : i32, i32
  }
  func.func @transform_1(%arg0: i32, %arg1: i32) -> (i32, i32, i32) {
    %c0_i32 = arith.constant 0 : i32
    %c0_i32_0 = arith.constant 0 : i32
    %c0_i32_1 = arith.constant 0 : i32
    return %arg1, %c0_i32, %c0_i32_0 : i32, i32, i32
  }
  func.func @transform_2(%arg0: i32, %arg1: i32) -> (i32, i32, i32) {
    %c0_i32 = arith.constant 0 : i32
    %c0_i32_0 = arith.constant 0 : i32
    return %arg1, %arg0, %c0_i32 : i32, i32, i32
  }
  func.func @transform_3(%arg0: i32, %arg1: i32) -> (i32, i32, i32, i32) {
    %c0_i32 = arith.constant 0 : i32
    %c0_i32_0 = arith.constant 0 : i32
    %c0_i32_1 = arith.constant 0 : i32
    return %arg1, %arg0, %c0_i32, %c0_i32_0 : i32, i32, i32, i32
  }
  func.func @transform_4(%arg0: i32, %arg1: i32) -> (i32, i32, i32, i32) {
    %c0_i32 = arith.constant 0 : i32
    %c0_i32_0 = arith.constant 0 : i32
    %c0_i32_1 = arith.constant 0 : i32
    return %arg1, %arg0, %c0_i32, %c0_i32_0 : i32, i32, i32, i32
  }
}

module attributes {stable_mosaic.version = 11 : i64} {
  func.func @_gemm_bias_kernel(%arg0: i32, %arg1: i32, %arg2: memref<128x72xbf16, #tpu.memory_space<vmem>>, %arg3: memref<1x72x8xbf16, #tpu.memory_space<vmem>>, %arg4: memref<1x8xf32, #tpu.memory_space<vmem>>, %arg5: memref<1x128x8xf32, #tpu.memory_space<vmem>>) attributes {dimension_semantics = [#tpu.dimension_semantics<parallel>, #tpu.dimension_semantics<parallel>], iteration_bounds = array<i64: 1, 4>, scalar_prefetch = 0 : i64, scratch_operands = 0 : i64, tpu.core_type = #tpu.core_type<tc>, window_params = [{transform_indices = @transform_0, window_bounds = array<i64: 128, 72>}, {transform_indices = @transform_1, window_bounds = array<i64: 1, 72, 8>}, {pipeline_mode = #tpu.pipeline_mode<synchronous>, transform_indices = @transform_2, window_bounds = array<i64: 1, 8>}, {transform_indices = @transform_3, window_bounds = array<i64: 1, 128, 8>}]} {
    %c0 = arith.constant 0 : index
    %c0_0 = arith.constant 0 : index
    %0 = vector.load %arg2[%c0, %c0_0] : memref<128x72xbf16, #tpu.memory_space<vmem>>, vector<128x72xbf16>
    %c0_1 = arith.constant 0 : index
    %c0_2 = arith.constant 0 : index
    %c0_3 = arith.constant 0 : index
    %1 = vector.load %arg3[%c0_1, %c0_2, %c0_3] : memref<1x72x8xbf16, #tpu.memory_space<vmem>>, vector<1x72x8xbf16>
    %2 = vector.shape_cast %1 : vector<1x72x8xbf16> to vector<72x8xbf16>
    %cst = arith.constant dense<0.000000e+00> : vector<128x8xf32>
    %3 = tpu.matmul %0, %2, %cst {dimension_numbers = #tpu.dot_dimension_numbers<[1], [0], [0], [1], [0, 0, 1, 1], [], []>} : vector<128x72xbf16>, vector<72x8xbf16>, vector<128x8xf32> -> vector<128x8xf32>
    %c0_4 = arith.constant 0 : index
    %c0_5 = arith.constant 0 : index
    %4 = vector.load %arg4[%c0_4, %c0_5] : memref<1x8xf32, #tpu.memory_space<vmem>>, vector<1x8xf32>
    %5 = vector.broadcast %4 : vector<1x8xf32> to vector<128x8xf32>
    %6 = arith.addf %3, %5 : vector<128x8xf32>
    %c0_6 = arith.constant 0 : index
    %c0_7 = arith.constant 0 : index
    %c0_8 = arith.constant 0 : index
    %7 = vector.load %arg5[%c0_6, %c0_7, %c0_8] : memref<1x128x8xf32, #tpu.memory_space<vmem>>, vector<1x128x8xf32>
    %8 = vector.shape_cast %7 : vector<1x128x8xf32> to vector<128x8xf32>
    %9 = vector.shape_cast %6 : vector<128x8xf32> to vector<1x128x8xf32>
    tpu.vector_store %arg5[%c0_6, %c0_7, %c0_8], %9 {strides = array<i32>} : memref<1x128x8xf32, #tpu.memory_space<vmem>>, vector<1x128x8xf32>,
    return
  }
  func.func @transform_0(%arg0: i32, %arg1: i32) -> (i32, i32) {
    %c0_i32 = arith.constant 0 : i32
    %c0_i32_0 = arith.constant 0 : i32
    return %arg0, %c0_i32 : i32, i32
  }
  func.func @transform_1(%arg0: i32, %arg1: i32) -> (i32, i32, i32) {
    %c0_i32 = arith.constant 0 : i32
    %c0_i32_0 = arith.constant 0 : i32
    %c0_i32_1 = arith.constant 0 : i32
    return %arg1, %c0_i32, %c0_i32_0 : i32, i32, i32
  }
  func.func @transform_2(%arg0: i32, %arg1: i32) -> (i32, i32) {
    %c0_i32 = arith.constant 0 : i32
    %c0_i32_0 = arith.constant 0 : i32
    %c0_i32_1 = arith.constant 0 : i32
    return %c0_i32, %c0_i32_0 : i32, i32
  }
  func.func @transform_3(%arg0: i32, %arg1: i32) -> (i32, i32, i32) {
    %c0_i32 = arith.constant 0 : i32
    %c0_i32_0 = arith.constant 0 : i32
    return %arg1, %arg0, %c0_i32 : i32, i32, i32
  }
}

</mosaic_0001>

<bundles_post_ra>
// kernel: fully_conv_network.15
= control target key start
LH: loop header
LB: loop body
LE: loop exit
PB: predicated region body
PF: predicated region fallthrough
CT: control target
= control target key end

     0   :  { %s484_s12 = smov 0   ;;  %s486_s13 = smov 0   ;;  %s530_s0 = inlined_call_operand.vmem [shape: bf16[1,128,128], index: 0, kind: input, shape index: {}]   ;;  %s531_s1 = inlined_call_operand.vmem [shape: f32[1,128], index: 1, kind: input, shape index: {}]   ;;  %s532_s2 = inlined_call_operand.vmem [shape: f32[1,128], index: 2, kind: input, shape index: {}]   ;;  %s533_s3 = inlined_call_operand.vmem [shape: bf16[1,128,128], index: 3, kind: output, shape index: {}]  }
   0x1   :  { %s488_s14 = smov 0  }
   0x2 LB: > { %s25_s15 = sadd.s32 1, %s458_s13  ;;  %p365_p0 = scmp.ge.s32.totalorder %s462_s14, 1  ;;  %s462_s14 = sphi %s488_s14, %s13_s14   ;;  %s458_s13 = sphi %s486_s13, %s535_s13   ;;  %s454_s12 = sphi %s484_s12, %s534_s12  }
   0x3   : > { %p27_p1 = scmp.ge.s32.totalorder %s25_s15, 2  ;;  %p158_p2 = scmp.lt.s32.totalorder %s462_s14, 3 }
   0x5   : > { %s537_s15 = smov (%p27_p1, %s25_s15), 0  ;;  %p159_p3 = pnand %p365_p0, %p158_p2 }
   0x6   : > { %s366_s16 = sshll.u32 (!%p159_p3), %s454_s12, 3 }
   0x7   : > { %162 = sbr.rel (%p159_p3) target bundleno = 30 (0x1e), region = 32  ;;  %p193_p4 = scmp.lt.s32.totalorder (!%p159_p3), %s366_s16, 15 }
   0xc   : > { %s539_s16 = smov (!%p193_p4, %s366_s16), 15  ;;  %v438_v0 = vld [vmem:[%s531_s1] ss:$0 sm:$0xff] }
   0xd   : > { %s367_s17 = sshll.u32 %s539_s16, 2  ;;  %v439_v6 = vld [vmem:[%s532_s2] ss:$0 sm:$0xff] }
   0xe   : > { %s198_s20 = scalar_lea.vmem %s530_s0, %s367_s17  ;;  %s208_s27 = scalar_lea.vmem %s533_s3, %s367_s17 }
   0xf   : > { %v373_v1 = vld [vmem:[%s198_s20] sm:$0xff]   ;;  %v408_v2 = vld [vmem:[%s198_s20 + $0x8] sm:$0xff]   ;;  %v409_v3 = vld [vmem:[%s198_s20 + $0x10] sm:$0xff]  }
  0x10   : > { %v374_v4 = vunpack.c.l.bf16 %v373_v1  ;;  %v375_v5 = vunpack.c.h.bf16 %v373_v1  ;;  %v378_v7 = vunpack.c.l.bf16 %v408_v2  ;;  %v379_v8 = vunpack.c.h.bf16 %v408_v2  ;;  %v410_v9 = vld [vmem:[%s198_s20 + $0x18] sm:$0xff]  }
  0x11   : > { %v382_v10 = vunpack.c.l.bf16 %v409_v3  ;;  %v383_v11 = vunpack.c.h.bf16 %v409_v3  ;;  %v386_v12 = vunpack.c.l.bf16 %v410_v9  ;;  %v387_v13 = vunpack.c.h.bf16 %v410_v9 }
  0x12   : > { %v230_v14 = vmul.f32 %v438_v0, %v374_v4  ;;  %v231_v15 = vmul.f32 %v438_v0, %v375_v5  ;;  %v232_v16 = vmul.f32 %v438_v0, %v378_v7  ;;  %v233_v17 = vmul.f32 %v438_v0, %v379_v8 }
  0x13   : > { %v234_v18 = vmul.f32 %v438_v0, %v382_v10  ;;  %v235_v19 = vmul.f32 %v438_v0, %v383_v11  ;;  %v236_v20 = vmul.f32 %v438_v0, %v386_v12  ;;  %v237_v21 = vmul.f32 %v438_v0, %v387_v13 }
  0x14   : > { %v242_v22 = vadd.f32 %v439_v6, %v230_v14  ;;  %v243_v23 = vadd.f32 %v439_v6, %v231_v15  ;;  %v244_v24 = vadd.f32 %v439_v6, %v232_v16  ;;  %v245_v25 = vadd.f32 %v439_v6, %v233_v17 }
  0x15   : > { %v246_v26 = vadd.f32 %v439_v6, %v234_v18  ;;  %v247_v27 = vadd.f32 %v439_v6, %v235_v19  ;;  %v248_v28 = vadd.f32 %v439_v6, %v236_v20  ;;  %v249_v29 = vadd.f32 %v439_v6, %v237_v21 }
  0x16   : > { %v250_v30 = vmax.f32 %v242_v22, 0.0  ;;  %v251_v31 = vmax.f32 %v243_v23, 0.0  ;;  %v252_v32 = vmax.f32 %v244_v24, 0.0  ;;  %v253_v33 = vmax.f32 %v245_v25, 0.0 }
  0x17   : > { %v254_v34 = vmax.f32 %v246_v26, 0.0  ;;  %v255_v35 = vmax.f32 %v247_v27, 0.0  ;;  %v256_v36 = vmax.f32 %v248_v28, 0.0  ;;  %v257_v37 = vmax.f32 %v249_v29, 0.0 }
  0x18   : > { %v391_v38 = vpack.c.bf16 %v251_v31, %v250_v30  ;;  %v396_v39 = vpack.c.bf16 %v253_v33, %v252_v32 }
  0x19   : > { %v401_v40 = vpack.c.bf16 %v255_v35, %v254_v34  ;;  %v406_v41 = vpack.c.bf16 %v257_v37, %v256_v36 }
  0x1a   : > { %392 = vst [vmem:[%s208_s27] sm:$0xff] %v391_v38  }
  0x1b   : > { %411 = vst [vmem:[%s208_s27 + $0x8] sm:$0xff] %v396_v39  }
  0x1c   : > { %412 = vst [vmem:[%s208_s27 + $0x10] sm:$0xff] %v401_v40  }
  0x1d   : > { %413 = vst [vmem:[%s208_s27 + $0x18] sm:$0xff] %v406_v41  }
  0x1e PF: > { %s13_s14 = sadd.s32 1, %s462_s14   ;;  %s534_s12 = smov %s458_s13 }
  0x1f   : > { %p10_p5 = scmp.ge.s32.totalorder %s13_s14, 4   ;;  %s535_s13 = smov %s537_s15 }
  0x21   :  { %12 = sbr.rel (!%p10_p5) target bundleno = 2 (0x2), region = 62 }

// kernel: fully_conv_network.14
= control target key start
LH: loop header
LB: loop body
LE: loop exit
PB: predicated region body
PF: predicated region fallthrough
CT: control target
= control target key end

     0   :  { %s761_s15 = smov 0   ;;  %s763_s16 = smov 0   ;;  %s814_s0 = inlined_call_operand.vmem [shape: bf16[128,48], index: 0, kind: input, shape index: {}]   ;;  %s815_s1 = inlined_call_operand.vmem [shape: bf16[1,48,128], index: 1, kind: input, shape index: {}]   ;;  %s816_s2 = inlined_call_operand.vmem [shape: bf16[1,128,128], index: 2, kind: output, shape index: {0}]   ;;  %s817_s3 = inlined_call_operand.vmem [shape: f32[1,2,1,128], index: 3, kind: output, shape index: {1}]   ;;  %s818_s4 = inlined_call_operand.vmem [shape: f32[1,2,1,128], index: 4, kind: output, shape index: {2}]  }
   0x1   :  { %s765_s17 = smov 0  }
   0x2 LB: > { %s27_s18 = sadd.s32 1, %s730_s16  ;;  %p610_p0 = scmp.ge.s32.totalorder %s734_s17, 1  ;;  %s734_s17 = sphi %s765_s17, %s15_s17   ;;  %s730_s16 = sphi %s763_s16, %s820_s16   ;;  %s726_s15 = sphi %s761_s15, %s819_s15  }
   0x3   : > { %p29_p1 = scmp.ge.s32.totalorder %s27_s18, 2  ;;  %p196_p2 = scmp.lt.s32.totalorder %s734_s17, 3 }
   0x5   : > { %s822_s18 = smov (%p29_p1, %s27_s18), 0  ;;  %p197_p3 = pnand %p610_p0, %p196_p2 }
   0x6   : > { %s611_s21 = sshll.u32 (!%p197_p3), %s726_s15, 3  ;;  %p268_p5 = scmp.lt.s32.totalorder (!%p197_p3), %s726_s15, 1 }
   0x7   : > { %200 = sbr.rel (%p197_p3) target bundleno = 187 (0xbb), region = 28  ;;  %p246_p4 = scmp.lt.s32.totalorder (!%p197_p3), %s611_s21, 15 }
   0xc   : > { %v655_v0 = vld [vmem:[%s815_s1 + $0x10] sm:$0xff]  ;;  %v654_v1 = vld [vmem:[%s815_s1 + $0x8] sm:$0xff]  ;;  %s824_s21 = smov (!%p246_p4, %s611_s21), 15  ;;  %v653_v2 = vld [vmem:[%s815_s1] sm:$0xff]  ;;  %vm333_vm0 = vcmask 392192   ;;  %s826_s15 = smov (!%p268_p5, %s726_s15), 1 }
   0xd   : > { %351 = vmatpush.bf16.msra.mxu0 %v655_v0  ;;  %679 = vmatpush.bf16.msra.mxu1 %v655_v0  ;;  %s612_s24 = sshll.u32 %s824_s21, 2  ;;  %s272_s9 = scalar_lea.vmem %s817_s3, %s826_s15 }
   0xe   : > { %680 = vmatpush.bf16.msra.mxu2 %v655_v0  ;;  %681 = vmatpush.bf16.msra.mxu3 %v655_v0  ;;  %s249_s29 = scalar_lea.vmem %s814_s0, %s612_s24  ;;  %s264_s6 = scalar_lea.vmem %s816_s2, %s612_s24 }
   0xf   : > { %v649_v3 = vld [vmem:[%s249_s29] sm:$0xff]  ;;  %v650_v4 = vld [vmem:[%s249_s29 + $0x8] sm:$0xff]  ;;  %v651_v5 = vld [vmem:[%s249_s29 + $0x10] sm:$0xff]  ;;  %s279_s12 = scalar_lea.vmem %s818_s4, %s826_s15 }
  0x10   : > { %v652_v6 = vld [vmem:[%s249_s29 + $0x18] sm:$0xff] }
  0x11   : > { %352 = vmatpush.bf16.msra.mxu0 %v654_v1  ;;  %682 = vmatpush.bf16.msra.mxu1 %v654_v1 }
  0x12   : > { %683 = vmatpush.bf16.msra.mxu2 %v654_v1  ;;  %684 = vmatpush.bf16.msra.mxu3 %v654_v1 }
  0x15   : > { %353 = vmatpush.bf16.msra.mxu0 %v653_v2  ;;  %685 = vmatpush.bf16.msra.mxu1 %v653_v2 }
  0x16   : > { %686 = vmatpush.bf16.msra.mxu2 %v653_v2  ;;  %687 = vmatpush.bf16.msra.mxu3 %v653_v2 }
  0x18   : > { %643 = vmatmul.msk.bf16.vlgmr.msra.gmra.mxu0 %vm333_vm0, %v649_v3  ;;  %644 = vmatmul.msk.bf16.vlgmr.msra.gmra.mxu1 %vm333_vm0, %v650_v4 }
  0x19   : > { %645 = vmatmul.msk.bf16.vlgmr.msra.gmra.mxu2 %vm333_vm0, %v651_v5  ;;  %646 = vmatmul.msk.bf16.vlgmr.msra.gmra.mxu3 %vm333_vm0, %v652_v6 }
  0x95   : > { %v355_v7 = vpop.f32.mrf.mxu0  ;;  %v360_v8 = vpop.f32.mrf.mxu1 }
  0x96   : > { %v405_v11 = vmul.f32 %v355_v7, %v355_v7  ;;  %v407_v18 = vmul.f32 %v360_v8, %v360_v8 }
  0x9c   : > { %v365_v9 = vpop.f32.mrf.mxu2  ;;  %v370_v10 = vpop.f32.mrf.mxu3 }
  0x9d   : > { %v357_v12 = vpop.f32.mrf.mxu0  ;;  %v362_v13 = vpop.f32.mrf.mxu1  ;;  %v409_v24 = vmul.f32 %v365_v9, %v365_v9  ;;  %v411_v34 = vmul.f32 %v370_v10, %v370_v10 }
  0x9e   : > { %v659_v14 = vpack.c.bf16 %v357_v12, %v355_v7  ;;  %v391_v15 = vadd.f32 %v357_v12, %v355_v7  ;;  %v406_v16 = vmul.f32 %v357_v12, %v357_v12  ;;  %v664_v17 = vpack.c.bf16 %v362_v13, %v360_v8 }
  0x9f   : > { %v408_v22 = vmul.f32 %v362_v13, %v362_v13 }
  0xa0   : > { %660 = vst [vmem:[%s264_s6] sm:$0xff] %v659_v14   ;;  %v413_v19 = vadd.f32 %v406_v16, %v405_v11  ;;  %v392_v20 = vadd.f32 %v391_v15, %v360_v8 }
  0xa1   : > { %676 = vst [vmem:[%s264_s6 + $0x8] sm:$0xff] %v664_v17  }
  0xa2   : > { %v393_v21 = vadd.f32 %v392_v20, %v362_v13  ;;  %v414_v23 = vadd.f32 %v413_v19, %v407_v18 }
  0xa4   : > { %v415_v25 = vadd.f32 %v414_v23, %v408_v22  ;;  %v367_v26 = vpop.f32.mrf.mxu2  ;;  %v394_v27 = vadd.f32 %v393_v21, %v365_v9  ;;  %v372_v28 = vpop.f32.mrf.mxu3 }
  0xa5   : > { %v669_v29 = vpack.c.bf16 %v367_v26, %v365_v9  ;;  %v674_v30 = vpack.c.bf16 %v372_v28, %v370_v10  ;;  %v410_v32 = vmul.f32 %v367_v26, %v367_v26  ;;  %v412_v38 = vmul.f32 %v372_v28, %v372_v28 }
  0xa6   : > { %v395_v31 = vadd.f32 %v394_v27, %v367_v26  ;;  %v416_v33 = vadd.f32 %v415_v25, %v409_v24 }
  0xa7   : > { %677 = vst [vmem:[%s264_s6 + $0x10] sm:$0xff] %v669_v29  }
  0xa8   : > { %v417_v35 = vadd.f32 %v416_v33, %v410_v32  ;;  %678 = vst [vmem:[%s264_s6 + $0x18] sm:$0xff] %v674_v30   ;;  %v396_v36 = vadd.f32 %v395_v31, %v370_v10 }
  0xaa   : > { %v397_v37 = vadd.f32 %v396_v36, %v372_v28  ;;  %v418_v39 = vadd.f32 %v417_v35, %v411_v34 }
  0xac   : > { %v398_v40 = vrot.slane %v397_v37, 4  ;;  %v419_v41 = vadd.f32 %v418_v39, %v412_v38 }
  0xae   : > { %v399_v42 = vadd.f32 %v398_v40, %v397_v37  ;;  %v420_v43 = vrot.slane %v419_v41, 4 }
  0xb0   : > { %v400_v44 = vrot.slane %v399_v42, 2  ;;  %v421_v45 = vadd.f32 %v420_v43, %v419_v41 }
  0xb2   : > { %v401_v46 = vadd.f32 %v400_v44, %v399_v42  ;;  %v422_v47 = vrot.slane %v421_v45, 2 }
  0xb4   : > { %v402_v48 = vrot.slane %v401_v46, 1  ;;  %v423_v49 = vadd.f32 %v422_v47, %v421_v45 }
  0xb6   : > { %v403_v50 = vadd.f32 %v402_v48, %v401_v46  ;;  %v424_v51 = vrot.slane %v423_v49, 1 }
  0xb8   : > { %404 = vst [vmem:[%s272_s9] sm:$0x1] %v403_v50  ;;  %v425_v52 = vadd.f32 %v424_v51, %v423_v49 }
  0xba   : > { %426 = vst [vmem:[%s279_s12] sm:$0x1] %v425_v52 }
  0xbb PF: > { %s15_s17 = sadd.s32 1, %s734_s17   ;;  %s819_s15 = smov %s730_s16 }
  0xbc   : > { %p12_p6 = scmp.ge.s32.totalorder %s15_s17, 4   ;;  %s820_s16 = smov %s822_s18 }
  0xbe   :  { %14 = sbr.rel (!%p12_p6) target bundleno = 2 (0x2), region = 85 }

// kernel: fully_conv_network.17
= control target key start
LH: loop header
LB: loop body
LE: loop exit
PB: predicated region body
PF: predicated region fallthrough
CT: control target
= control target key end

     0   :  { %s409_s12 = smov 0   ;;  %s411_s13 = smov 0   ;;  %s445_s0 = inlined_call_operand.vmem [shape: bf16[1,32,128], index: 0, kind: input, shape index: {}]   ;;  %s446_s1 = inlined_call_operand.vmem [shape: f32[1,128], index: 1, kind: input, shape index: {}]   ;;  %s447_s2 = inlined_call_operand.vmem [shape: f32[1,128], index: 2, kind: input, shape index: {}]   ;;  %s448_s3 = inlined_call_operand.vmem [shape: bf16[1,32,128], index: 3, kind: output, shape index: {}]  }
   0x1   :  { %s413_s14 = smov 0  }
   0x2 LB: > { %s25_s15 = sadd.s32 1, %s383_s13  ;;  %p323_p0 = scmp.ge.s32.totalorder %s387_s14, 1  ;;  %s387_s14 = sphi %s413_s14, %s13_s14   ;;  %s383_s13 = sphi %s411_s13, %s450_s13   ;;  %s379_s12 = sphi %s409_s12, %s449_s12  }
   0x3   : > { %p27_p1 = scmp.ge.s32.totalorder %s25_s15, 2  ;;  %p158_p2 = scmp.lt.s32.totalorder %s387_s14, 3 }
   0x5   : > { %s452_s15 = smov (%p27_p1, %s25_s15), 0  ;;  %p159_p3 = pnand %p323_p0, %p158_p2 }
   0x6   : > { %s324_s16 = sshll.u32 (!%p159_p3), %s379_s12, 1 }
   0x7   : > { %162 = sbr.rel (%p159_p3) target bundleno = 27 (0x1b), region = 32  ;;  %p193_p4 = scmp.lt.s32.totalorder (!%p159_p3), %s324_s16, 3 }
   0xc   : > { %s454_s16 = smov (!%p193_p4, %s324_s16), 3  ;;  %v363_v0 = vld [vmem:[%s446_s1] ss:$0 sm:$0xff] }
   0xd   : > { %s325_s17 = sshll.u32 %s454_s16, 2  ;;  %v364_v4 = vld [vmem:[%s447_s2] ss:$0 sm:$0xff] }
   0xe   : > { %s198_s20 = scalar_lea.vmem %s445_s0, %s325_s17  ;;  %s208_s27 = scalar_lea.vmem %s448_s3, %s325_s17 }
   0xf   : > { %v331_v1 = vld [vmem:[%s198_s20] sm:$0xff]  }
  0x10   : > { %v332_v2 = vunpack.c.l.bf16 %v331_v1  ;;  %v333_v3 = vunpack.c.h.bf16 %v331_v1 }
  0x12   : > { %v218_v5 = vmul.f32 %v363_v0, %v332_v2  ;;  %v219_v6 = vmul.f32 %v363_v0, %v333_v3 }
  0x14   : > { %v224_v7 = vadd.f32 %v364_v4, %v218_v5  ;;  %v225_v8 = vadd.f32 %v364_v4, %v219_v6 }
  0x16   : > { %v226_v9 = vmax.f32 %v224_v7, 0.0  ;;  %v227_v10 = vmax.f32 %v225_v8, 0.0 }
  0x18   : > { %v337_v11 = vpack.c.bf16 %v227_v10, %v226_v9 }
  0x1a   : > { %338 = vst [vmem:[%s208_s27] sm:$0xff] %v337_v11  }
  0x1b PF: > { %s13_s14 = sadd.s32 1, %s387_s14   ;;  %s449_s12 = smov %s383_s13 }
  0x1c   : > { %p10_p5 = scmp.ge.s32.totalorder %s13_s14, 4   ;;  %s450_s13 = smov %s452_s15 }
  0x1e   :  { %12 = sbr.rel (!%p10_p5) target bundleno = 2 (0x2), region = 62 }

// kernel: fully_conv_network.16
= control target key start
LH: loop header
LB: loop body
LE: loop exit
PB: predicated region body
PF: predicated region fallthrough
CT: control target
= control target key end

     0   :  { %s701_s15 = smov 0   ;;  %s703_s16 = smov 0   ;;  %s769_s0 = inlined_call_operand.vmem [shape: bf16[32,128], index: 0, kind: input, shape index: {}]   ;;  %s770_s1 = inlined_call_operand.vmem [shape: bf16[1,128,128], index: 1, kind: input, shape index: {}]   ;;  %s771_s2 = inlined_call_operand.vmem [shape: bf16[1,32,128], index: 2, kind: output, shape index: {0}]   ;;  %s772_s3 = inlined_call_operand.vmem [shape: f32[1,2,1,128], index: 3, kind: output, shape index: {1}]   ;;  %s773_s4 = inlined_call_operand.vmem [shape: f32[1,2,1,128], index: 4, kind: output, shape index: {2}]  }
   0x1   :  { %s705_s17 = smov 0  }
   0x2 LB: > { %s27_s18 = sadd.s32 1, %s670_s16  ;;  %p571_p0 = scmp.ge.s32.totalorder %s674_s17, 1  ;;  %s674_s17 = sphi %s705_s17, %s15_s17   ;;  %s670_s16 = sphi %s703_s16, %s775_s16   ;;  %s666_s15 = sphi %s701_s15, %s774_s15  }
   0x3   : > { %p29_p1 = scmp.ge.s32.totalorder %s27_s18, 2  ;;  %p196_p2 = scmp.lt.s32.totalorder %s674_s17, 3 }
   0x5   : > { %s777_s18 = smov (%p29_p1, %s27_s18), 0  ;;  %p197_p3 = pnand %p571_p0, %p196_p2 }
   0x6   : > { %s572_s27 = sshll.u32 (!%p197_p3), %s666_s15, 1  ;;  %p268_p5 = scmp.lt.s32.totalorder (!%p197_p3), %s666_s15, 1 }
   0x7   : > { %200 = sbr.rel (%p197_p3) target bundleno = 195 (0xc3), region = 28  ;;  %p246_p4 = scmp.lt.s32.totalorder (!%p197_p3), %s572_s27, 3 }
   0xc   : > { %v622_v0 = vld [vmem:[%s770_s1 + $0x38] sm:$0xff]  ;;  %v621_v1 = vld [vmem:[%s770_s1 + $0x30] sm:$0xff]  ;;  %v620_v2 = vld [vmem:[%s770_s1 + $0x28] sm:$0xff]  ;;  %s779_s27 = smov (!%p246_p4, %s572_s27), 3  ;;  %s781_s15 = smov (!%p268_p5, %s666_s15), 1 }
   0xd   : > { %352 = vmatpush.bf16.msra.mxu0 %v622_v0  ;;  %v619_v3 = vld [vmem:[%s770_s1 + $0x20] sm:$0xff]  ;;  %v618_v4 = vld [vmem:[%s770_s1 + $0x18] sm:$0xff]  ;;  %v617_v5 = vld [vmem:[%s770_s1 + $0x10] sm:$0xff]  ;;  %s573_s8 = sshll.u32 %s779_s27, 2  ;;  %s272_s23 = scalar_lea.vmem %s772_s3, %s781_s15 }
   0xe   : > { %v616_v6 = vld [vmem:[%s770_s1 + $0x8] sm:$0xff]  ;;  %v615_v7 = vld [vmem:[%s770_s1] sm:$0xff]  ;;  %s249_s13 = scalar_lea.vmem %s769_s0, %s573_s8  ;;  %s264_s20 = scalar_lea.vmem %s771_s2, %s573_s8 }
   0xf   : > { %v614_v8 = vld [vmem:[%s249_s13] sm:$0xff]  ;;  %s279_s26 = scalar_lea.vmem %s773_s4, %s781_s15 }
  0x11   : > { %353 = vmatpush.bf16.msra.mxu0 %v621_v1 }
  0x15   : > { %354 = vmatpush.bf16.msra.mxu0 %v620_v2 }
  0x19   : > { %355 = vmatpush.bf16.msra.mxu0 %v619_v3 }
  0x1d   : > { %356 = vmatpush.bf16.msra.mxu0 %v618_v4 }
  0x21   : > { %357 = vmatpush.bf16.msra.mxu0 %v617_v5 }
  0x25   : > { %358 = vmatpush.bf16.msra.mxu0 %v616_v6 }
  0x29   : > { %359 = vmatpush.bf16.msra.mxu0 %v615_v7 }
  0x2c   : > { %360 = vmatmul.bf16.vlgmr.msra.gmra.mxu0 %v614_v8 }
  0xa9   : > { %v361_v9 = vpop.f32.mrf.mxu0 }
  0xaa   : > { %v378_v11 = vmul.f32 %v361_v9, %v361_v9 }
  0xb1   : > { %v363_v10 = vpop.f32.mrf.mxu0 }
  0xb2   : > { %v626_v12 = vpack.c.bf16 %v363_v10, %v361_v9  ;;  %v370_v13 = vadd.f32 %v363_v10, %v361_v9  ;;  %v379_v14 = vmul.f32 %v363_v10, %v363_v10 }
  0xb4   : > { %627 = vst [vmem:[%s264_s20] sm:$0xff] %v626_v12   ;;  %v371_v15 = vrot.slane %v370_v13, 4  ;;  %v380_v16 = vadd.f32 %v379_v14, %v378_v11 }
  0xb6   : > { %v372_v17 = vadd.f32 %v371_v15, %v370_v13  ;;  %v381_v18 = vrot.slane %v380_v16, 4 }
  0xb8   : > { %v373_v19 = vrot.slane %v372_v17, 2  ;;  %v382_v20 = vadd.f32 %v381_v18, %v380_v16 }
  0xba   : > { %v374_v21 = vadd.f32 %v373_v19, %v372_v17  ;;  %v383_v22 = vrot.slane %v382_v20, 2 }
  0xbc   : > { %v375_v23 = vrot.slane %v374_v21, 1  ;;  %v384_v24 = vadd.f32 %v383_v22, %v382_v20 }
  0xbe   : > { %v376_v25 = vadd.f32 %v375_v23, %v374_v21  ;;  %v385_v26 = vrot.slane %v384_v24, 1 }
  0xc0   : > { %377 = vst [vmem:[%s272_s23] sm:$0x1] %v376_v25  ;;  %v386_v27 = vadd.f32 %v385_v26, %v384_v24 }
  0xc2   : > { %387 = vst [vmem:[%s279_s26] sm:$0x1] %v386_v27 }
  0xc3 PF: > { %s15_s17 = sadd.s32 1, %s674_s17   ;;  %s774_s15 = smov %s670_s16 }
  0xc4   : > { %p12_p6 = scmp.ge.s32.totalorder %s15_s17, 4   ;;  %s775_s16 = smov %s777_s18 }
  0xc6   :  { %14 = sbr.rel (!%p12_p6) target bundleno = 2 (0x2), region = 85 }

// kernel: fully_conv_network.18
= control target key start
LH: loop header
LB: loop body
LE: loop exit
PB: predicated region body
PF: predicated region fallthrough
CT: control target
= control target key end

     0   :  { %s370_s1 = inlined_call_operand.vmem [shape: bf16[1,256,128], index: 1, kind: input, shape index: {}]   ;;  %s371_s0 = inlined_call_operand.vmem [shape: bf16[8,256], index: 0, kind: input, shape index: {}]   ;;  %s372_s2 = inlined_call_operand.vmem [shape: bf16[1,8,128], index: 2, kind: output, shape index: {0}]   ;;  %s373_s3 = inlined_call_operand.vmem [shape: f32[1,1,1,128], index: 3, kind: output, shape index: {1}]   ;;  %s374_s4 = inlined_call_operand.vmem [shape: f32[1,1,1,128], index: 4, kind: output, shape index: {2}]  }
   0x1   :  { %v276_v0 = vld [vmem:[%s370_s1 + $0x38] sm:$0xff]  ;;  %v275_v2 = vld [vmem:[%s370_s1 + $0x30] sm:$0xff]  ;;  %v274_v4 = vld [vmem:[%s370_s1 + $0x28] sm:$0xff] }
   0x2   :  { %v284_v1 = vld [vmem:[%s370_s1 + $0x78] sm:$0xff]  ;;  %150 = vmatpush.bf16.msra.mxu0 %v276_v0  ;;  %v283_v3 = vld [vmem:[%s370_s1 + $0x70] sm:$0xff]  ;;  %v282_v5 = vld [vmem:[%s370_s1 + $0x68] sm:$0xff] }
   0x3   :  { %163 = vmatpush.bf16.msra.mxu1 %v284_v1  ;;  %v273_v6 = vld [vmem:[%s370_s1 + $0x20] sm:$0xff]  ;;  %v272_v8 = vld [vmem:[%s370_s1 + $0x18] sm:$0xff]  ;;  %v271_v10 = vld [vmem:[%s370_s1 + $0x10] sm:$0xff] }
   0x4   :  { %v281_v7 = vld [vmem:[%s370_s1 + $0x60] sm:$0xff]  ;;  %v280_v9 = vld [vmem:[%s370_s1 + $0x58] sm:$0xff]  ;;  %v279_v11 = vld [vmem:[%s370_s1 + $0x50] sm:$0xff] }
   0x5   :  { %v270_v12 = vld [vmem:[%s370_s1 + $0x8] sm:$0xff]  ;;  %v14_v14 = vld [vmem:[%s371_s0] sm:$0xff] }
   0x6   :  { %151 = vmatpush.bf16.msra.mxu0 %v275_v2  ;;  %v278_v13 = vld [vmem:[%s370_s1 + $0x48] sm:$0xff]  ;;  %v48_v15 = vunpack.c.l.b16 %v14_v14  ;;  %v49_v16 = vunpack.c.h.b16 %v14_v14  ;;  %v269_v17 = vld [vmem:[%s370_s1] sm:$0xff] }
   0x7   :  { %164 = vmatpush.bf16.msra.mxu1 %v283_v3  ;;  %v277_v18 = vld [vmem:[%s370_s1 + $0x40] sm:$0xff] }
   0x8   :  { %v50_v19 = vpack.c.b16 %v48_v15, %v48_v15  ;;  %v51_v20 = vpack.c.b16 %v49_v16, %v49_v16 }
   0xa   :  { %152 = vmatpush.bf16.msra.mxu0 %v274_v4 }
   0xb   :  { %165 = vmatpush.bf16.msra.mxu1 %v282_v5 }
   0xe   :  { %153 = vmatpush.bf16.msra.mxu0 %v273_v6 }
   0xf   :  { %166 = vmatpush.bf16.msra.mxu1 %v281_v7 }
  0x12   :  { %154 = vmatpush.bf16.msra.mxu0 %v272_v8 }
  0x13   :  { %167 = vmatpush.bf16.msra.mxu1 %v280_v9 }
  0x16   :  { %155 = vmatpush.bf16.msra.mxu0 %v271_v10 }
  0x17   :  { %168 = vmatpush.bf16.msra.mxu1 %v279_v11 }
  0x1a   :  { %156 = vmatpush.bf16.msra.mxu0 %v270_v12 }
  0x1b   :  { %169 = vmatpush.bf16.msra.mxu1 %v278_v13 }
  0x1e   :  { %157 = vmatpush.bf16.msra.mxu0 %v269_v17 }
  0x1f   :  { %170 = vmatpush.bf16.msra.mxu1 %v277_v18 }
  0x21   :  { %158 = vmatmul.bf16.vlgmr.msra.gmra.mxu0 %v50_v19 }
  0x22   :  { %171 = vmatmul.bf16.vlgmr.msra.gmra.mxu1 %v51_v20 }
  0x9e   :  { %v159_v21 = vpop.f32.mrf.mxu0 }
  0x9f   :  { %v172_v22 = vpop.f32.mrf.mxu1 }
  0xa0   :  { %v173_v23 = vadd.f32 %v172_v22, %v159_v21 }
  0xa2   :  { %v176_v24 = vpack.c.bf16 %v173_v23, %v173_v23  ;;  %v178_v25 = vrot.slane %v173_v23, 4  ;;  %v185_v26 = vmul.f32 %v173_v23, %v173_v23 }
  0xa4   :  { %177 = vst [vmem:[%s372_s2] sm:$0xf] %v176_v24  ;;  %v179_v27 = vadd.f32 %v178_v25, %v173_v23  ;;  %v186_v28 = vrot.slane %v185_v26, 4 }
  0xa6   :  { %v180_v29 = vrot.slane %v179_v27, 2  ;;  %v187_v30 = vadd.f32 %v186_v28, %v185_v26  ;;  %v161_v31 = vpop.f32.mrf.mxu0 }
  0xa7   :  { %v174_v32 = vpop.f32.mrf.mxu1 }
  0xa8   :  { %v181_v33 = vadd.f32 %v180_v29, %v179_v27  ;;  %v188_v34 = vrot.slane %v187_v30, 2 }
  0xaa   :  { %v182_v35 = vrot.slane %v181_v33, 1  ;;  %v189_v36 = vadd.f32 %v188_v34, %v187_v30 }
  0xac   :  { %v183_v37 = vadd.f32 %v182_v35, %v181_v33  ;;  %v190_v38 = vrot.slane %v189_v36, 1 }
  0xae   :  { %184 = vst [vmem:[%s373_s3] sm:$0x1] %v183_v37  ;;  %v191_v39 = vadd.f32 %v190_v38, %v189_v36 }
  0xb0   :  { %192 = vst [vmem:[%s374_s4] sm:$0x1] %v191_v39 }

// kernel: fully_conv_network.19
= control target key start
LH: loop header
LB: loop body
LE: loop exit
PB: predicated region body
PF: predicated region fallthrough
CT: control target
= control target key end

     0   :  { %s67_s0 = inlined_call_operand.vmem [shape: bf16[1,8,128], index: 0, kind: input, shape index: {}]   ;;  %s68_s1 = inlined_call_operand.vmem [shape: f32[1,128], index: 1, kind: input, shape index: {}]   ;;  %s69_s2 = inlined_call_operand.vmem [shape: f32[1,128], index: 2, kind: input, shape index: {}]   ;;  %s70_s3 = inlined_call_operand.vmem [shape: bf16[1,8,128], index: 3, kind: output, shape index: {}]  }
   0x1   :  { %v14_v0 = vld [vmem:[%s67_s0] sm:$0xf] }
   0x2   :  { %v33_v1 = vld [vmem:[%s68_s1] ss:$0 sm:$0xff]  ;;  %v15_v2 = vunpack.c.l.bf16 %v14_v0 }
   0x3   :  { %v34_v3 = vld [vmem:[%s69_s2] ss:$0 sm:$0xff] }
   0x4   :  { %v20_v4 = vmul.f32 %v33_v1, %v15_v2 }
   0x6   :  { %v25_v5 = vadd.f32 %v34_v3, %v20_v4 }
   0x8   :  { %v26_v6 = vmax.f32 %v25_v5, 0.0 }
   0xa   :  { %v27_v7 = vpack.c.bf16 %v26_v6, %v26_v6 }
   0xc   :  { %28 = vst [vmem:[%s70_s3] sm:$0xf] %v27_v7 }

// kernel: fully_conv_network.20
= control target key start
LH: loop header
LB: loop body
LE: loop exit
PB: predicated region body
PF: predicated region fallthrough
CT: control target
= control target key end

     0   :  { %s629_s1 = inlined_call_operand.vmem [shape: bf16[1,512,128], index: 1, kind: input, shape index: {}]   ;;  %s630_s0 = inlined_call_operand.vmem [shape: bf16[2,512], index: 0, kind: input, shape index: {}]   ;;  %s631_s2 = inlined_call_operand.vmem [shape: f32[1,128], index: 2, kind: input, shape index: {}]   ;;  %s632_s3 = inlined_call_operand.vmem [shape: bf16[1,2,128], index: 3, kind: output, shape index: {}]  }
   0x1   :  { %v478_v0 = vld [vmem:[%s629_s1 + $0x38] sm:$0xff]  ;;  %v477_v4 = vld [vmem:[%s629_s1 + $0x30] sm:$0xff]  ;;  %v476_v8 = vld [vmem:[%s629_s1 + $0x28] sm:$0xff] }
   0x2   :  { %v486_v1 = vld [vmem:[%s629_s1 + $0x78] sm:$0xff]  ;;  %285 = vmatpush.bf16.msra.mxu0 %v478_v0  ;;  %v485_v5 = vld [vmem:[%s629_s1 + $0x70] sm:$0xff]  ;;  %v484_v9 = vld [vmem:[%s629_s1 + $0x68] sm:$0xff] }
   0x3   :  { %v494_v2 = vld [vmem:[%s629_s1 + $0xb8] sm:$0xff]  ;;  %298 = vmatpush.bf16.msra.mxu1 %v486_v1  ;;  %v493_v6 = vld [vmem:[%s629_s1 + $0xb0] sm:$0xff]  ;;  %v492_v10 = vld [vmem:[%s629_s1 + $0xa8] sm:$0xff] }
   0x4   :  { %v502_v3 = vld [vmem:[%s629_s1 + $0xf8] sm:$0xff]  ;;  %311 = vmatpush.bf16.msra.mxu2 %v494_v2  ;;  %v501_v7 = vld [vmem:[%s629_s1 + $0xf0] sm:$0xff]  ;;  %v500_v11 = vld [vmem:[%s629_s1 + $0xe8] sm:$0xff] }
   0x5   :  { %324 = vmatpush.bf16.msra.mxu3 %v502_v3  ;;  %v475_v12 = vld [vmem:[%s629_s1 + $0x20] sm:$0xff]  ;;  %v474_v17 = vld [vmem:[%s629_s1 + $0x18] sm:$0xff]  ;;  %v473_v21 = vld [vmem:[%s629_s1 + $0x10] sm:$0xff] }
   0x6   :  { %286 = vmatpush.bf16.msra.mxu0 %v477_v4  ;;  %v483_v13 = vld [vmem:[%s629_s1 + $0x60] sm:$0xff]  ;;  %v482_v18 = vld [vmem:[%s629_s1 + $0x58] sm:$0xff]  ;;  %v481_v22 = vld [vmem:[%s629_s1 + $0x50] sm:$0xff] }
   0x7   :  { %299 = vmatpush.bf16.msra.mxu1 %v485_v5  ;;  %v14_v14 = vld [vmem:[%s630_s0] sm:$0xf]  ;;  %v490_v19 = vld [vmem:[%s629_s1 + $0x98] sm:$0xff]  ;;  %v489_v23 = vld [vmem:[%s629_s1 + $0x90] sm:$0xff] }
   0x8   :  { %312 = vmatpush.bf16.msra.mxu2 %v493_v6  ;;  %v491_v15 = vld [vmem:[%s629_s1 + $0xa0] sm:$0xff]  ;;  %84 = vst [vmem:[#allocation1] ss:$9 sm:$0xff] %v14_v14  ;;  %v498_v20 = vld [vmem:[%s629_s1 + $0xd8] sm:$0xff]  ;;  %v497_v24 = vld [vmem:[%s629_s1 + $0xd0] sm:$0xff] }
   0x9   :  { %325 = vmatpush.bf16.msra.mxu3 %v501_v7  ;;  %v499_v16 = vld [vmem:[%s629_s1 + $0xe0] sm:$0xff]  ;;  %v472_v25 = vld [vmem:[%s629_s1 + $0x8] sm:$0xff] }
   0xa   :  { %287 = vmatpush.bf16.msra.mxu0 %v476_v8  ;;  %v480_v26 = vld [vmem:[%s629_s1 + $0x48] sm:$0xff]  ;;  %v471_v29 = vld [vmem:[%s629_s1] sm:$0xff] }
   0xb   :  { %300 = vmatpush.bf16.msra.mxu1 %v484_v9  ;;  %v488_v27 = vld [vmem:[%s629_s1 + $0x88] sm:$0xff]  ;;  %v479_v30 = vld [vmem:[%s629_s1 + $0x40] sm:$0xff] }
   0xc   :  { %313 = vmatpush.bf16.msra.mxu2 %v492_v10  ;;  %v496_v28 = vld [vmem:[%s629_s1 + $0xc8] sm:$0xff]  ;;  %v487_v31 = vld [vmem:[%s629_s1 + $0x80] sm:$0xff] }
   0xd   :  { %326 = vmatpush.bf16.msra.mxu3 %v500_v11  ;;  %v495_v32 = vld [vmem:[%s629_s1 + $0xc0] sm:$0xff] }
   0xe   :  { %288 = vmatpush.bf16.msra.mxu0 %v475_v12  ;;  %v503_v37 = vld [vmem:[%s631_s2] ss:$0 sm:$0xff] }
   0xf   :  { %301 = vmatpush.bf16.msra.mxu1 %v483_v13  ;;  %v85_v33 = vld [vmem:[#allocation1] sm:$0xff]  ;;  %v86_v34 = vld [vmem:[#allocation1 + $0x9] sm:$0xff]  ;;  %v87_v35 = vld [vmem:[#allocation1 + $0x12] sm:$0xff] }
  0x10   :  { %314 = vmatpush.bf16.msra.mxu2 %v491_v15  ;;  %v88_v36 = vld [vmem:[#allocation1 + $0x1b] sm:$0xff] }
  0x11   :  { %327 = vmatpush.bf16.msra.mxu3 %v499_v16 }
  0x12   :  { %289 = vmatpush.bf16.msra.mxu0 %v474_v17 }
  0x13   :  { %302 = vmatpush.bf16.msra.mxu1 %v482_v18 }
  0x14   :  { %315 = vmatpush.bf16.msra.mxu2 %v490_v19 }
  0x15   :  { %328 = vmatpush.bf16.msra.mxu3 %v498_v20 }
  0x16   :  { %290 = vmatpush.bf16.msra.mxu0 %v473_v21 }
  0x17   :  { %303 = vmatpush.bf16.msra.mxu1 %v481_v22 }
  0x18   :  { %316 = vmatpush.bf16.msra.mxu2 %v489_v23 }
  0x19   :  { %329 = vmatpush.bf16.msra.mxu3 %v497_v24 }
  0x1a   :  { %291 = vmatpush.bf16.msra.mxu0 %v472_v25 }
  0x1b   :  { %304 = vmatpush.bf16.msra.mxu1 %v480_v26 }
  0x1c   :  { %317 = vmatpush.bf16.msra.mxu2 %v488_v27 }
  0x1d   :  { %330 = vmatpush.bf16.msra.mxu3 %v496_v28 }
  0x1e   :  { %292 = vmatpush.bf16.msra.mxu0 %v471_v29 }
  0x1f   :  { %305 = vmatpush.bf16.msra.mxu1 %v479_v30 }
  0x20   :  { %318 = vmatpush.bf16.msra.mxu2 %v487_v31 }
  0x21   :  { %331 = vmatpush.bf16.msra.mxu3 %v495_v32  ;;  %293 = vmatmul.bf16.vlgmr.msra.gmra.mxu0 %v85_v33 }
  0x22   :  { %306 = vmatmul.bf16.vlgmr.msra.gmra.mxu1 %v86_v34 }
  0x23   :  { %319 = vmatmul.bf16.vlgmr.msra.gmra.mxu2 %v87_v35 }
  0x24   :  { %332 = vmatmul.bf16.vlgmr.msra.gmra.mxu3 %v88_v36 }
  0x9e   :  { %v294_v38 = vpop.f32.mrf.mxu0 }
  0x9f   :  { %v307_v39 = vpop.f32.mrf.mxu1  ;;  %v295_v40 = vadd.f32 %v503_v37, %v294_v38 }
  0xa1   :  { %v308_v41 = vadd.f32 %v307_v39, %v295_v40 }
  0xa6   :  { %v320_v42 = vpop.f32.mrf.mxu2  ;;  %v296_v45 = vpop.f32.mrf.mxu0 }
  0xa7   :  { %v333_v43 = vpop.f32.mrf.mxu3  ;;  %v321_v44 = vadd.f32 %v320_v42, %v308_v41  ;;  %v309_v46 = vpop.f32.mrf.mxu1 }
  0xa9   :  { %v334_v47 = vadd.f32 %v333_v43, %v321_v44 }
  0xab   :  { %v337_v48 = vpack.c.bf16 %v334_v47, %v334_v47 }
  0xad   :  { %338 = vst [vmem:[%s632_s3] sm:$0x1] %v337_v48 }
  0xae   :  { %v322_v49 = vpop.f32.mrf.mxu2 }
  0xaf   :  { %v335_v50 = vpop.f32.mrf.mxu3 }

// kernel: fully_conv_network.22
= control target key start
LH: loop header
LB: loop body
LE: loop exit
PB: predicated region body
PF: predicated region fallthrough
CT: control target
= control target key end

     0   :  { %s349_s12 = smov 0   ;;  %s351_s13 = smov 0   ;;  %s376_s0 = inlined_call_operand.vmem [shape: bf16[4,2,128], index: 0, kind: input, shape index: {}]   ;;  %s377_s1 = inlined_call_operand.vmem [shape: f32[1,128], index: 1, kind: input, shape index: {}]   ;;  %s378_s2 = inlined_call_operand.vmem [shape: f32[1,128], index: 2, kind: input, shape index: {}]   ;;  %s379_s3 = inlined_call_operand.vmem [shape: bf16[4,2,128], index: 3, kind: output, shape index: {}]  }
   0x1   :  { %s353_s14 = smov 0  }
   0x2 LB: > { %s22_s15 = sadd.s32 1, %s323_s13  ;;  %p276_p0 = scmp.ge.s32.totalorder %s327_s14, 1  ;;  %s327_s14 = sphi %s353_s14, %s13_s14   ;;  %s323_s13 = sphi %s351_s13, %s381_s13   ;;  %s319_s12 = sphi %s349_s12, %s380_s12  }
   0x3   : > { %p23_p1 = scmp.ge.s32.totalorder %s22_s15, 4  ;;  %p154_p2 = scmp.lt.s32.totalorder %s327_s14, 5 }
   0x5   : > { %s383_s15 = smov (%p23_p1, %s22_s15), 0  ;;  %p155_p3 = pnand %p276_p0, %p154_p2 }
   0x6   : > { %p180_p4 = scmp.lt.s32.totalorder (!%p155_p3), %s319_s12, 3 }
   0x7   : > { %158 = sbr.rel (%p155_p3) target bundleno = 26 (0x1a), region = 32 }
   0xc   : > { %s385_s12 = smov (!%p180_p4, %s319_s12), 3  ;;  %v303_v0 = vld [vmem:[%s377_s1] ss:$0 sm:$0xff] }
   0xd   : > { %s185_s18 = scalar_lea.vmem %s376_s0, %s385_s12  ;;  %v304_v3 = vld [vmem:[%s378_s2] ss:$0 sm:$0xff]  ;;  %s191_s25 = scalar_lea.vmem %s379_s3, %s385_s12 }
   0xe   : > { %v192_v1 = vld [vmem:[%s185_s18] sm:$0x1] }
   0xf   : > { %v193_v2 = vunpack.c.l.bf16 %v192_v1 }
  0x11   : > { %v198_v4 = vmul.f32 %v303_v0, %v193_v2 }
  0x13   : > { %v203_v5 = vadd.f32 %v304_v3, %v198_v4 }
  0x15   : > { %v204_v6 = vmax.f32 %v203_v5, 0.0 }
  0x17   : > { %v205_v7 = vpack.c.bf16 %v204_v6, %v204_v6 }
  0x19   : > { %206 = vst [vmem:[%s191_s25] sm:$0x1] %v205_v7 }
  0x1a PF: > { %s13_s14 = sadd.s32 1, %s327_s14   ;;  %s380_s12 = smov %s323_s13 }
  0x1b   : > { %p10_p5 = scmp.ge.s32.totalorder %s13_s14, 6   ;;  %s381_s13 = smov %s383_s15 }
  0x1d   :  { %12 = sbr.rel (!%p10_p5) target bundleno = 2 (0x2), region = 62 }

// kernel: fully_conv_network.21
= control target key start
LH: loop header
LB: loop body
LE: loop exit
PB: predicated region body
PF: predicated region fallthrough
CT: control target
= control target key end

     0   :  { %s1068_s15 = smov 0   ;;  %s1070_s16 = smov 0   ;;  %s1154_s0 = inlined_call_operand.vmem [shape: bf16[2,576], index: 0, kind: input, shape index: {}]   ;;  %s1155_s1 = inlined_call_operand.vmem [shape: bf16[4,576,128], index: 1, kind: input, shape index: {}]   ;;  %s1156_s2 = inlined_call_operand.vmem [shape: bf16[4,2,128], index: 2, kind: output, shape index: {0}]   ;;  %s1157_s3 = inlined_call_operand.vmem [shape: f32[4,1,1,128], index: 3, kind: output, shape index: {1}]   ;;  %s1158_s4 = inlined_call_operand.vmem [shape: f32[4,1,1,128], index: 4, kind: output, shape index: {2}]  }
   0x1   :  { %s1072_s17 = smov 0  }
   0x2 LB: > { %s24_s18 = sadd.s32 1, %s1037_s16  ;;  %p809_p0 = scmp.ge.s32.totalorder %s1041_s17, 1  ;;  %s1041_s17 = sphi %s1072_s17, %s15_s17   ;;  %s1037_s16 = sphi %s1070_s16, %s1160_s16   ;;  %s1033_s15 = sphi %s1068_s15, %s1159_s15  }
   0x3   : > { %p25_p1 = scmp.ge.s32.totalorder %s24_s18, 4  ;;  %p194_p2 = scmp.lt.s32.totalorder %s1041_s17, 5 }
   0x5   : > { %s1162_s18 = smov (%p25_p1, %s24_s18), 0  ;;  %p195_p3 = pnand %p809_p0, %p194_p2 }
   0x6   : > { %p241_p4 = scmp.lt.s32.totalorder (!%p195_p3), %s1033_s15, 3 }
   0x7   : > { %198 = sbr.rel (%p195_p3) target bundleno = 208 (0xd0), region = 28 }
   0xc   : > { %v265_v0 = vld [vmem:[%s1154_s0] sm:$0x1f]  ;;  %s1164_s15 = smov (!%p241_p4, %s1033_s15), 3  ;;  %vm565_vm0 = vcmask 523264   ;;  %vm635_vm1 = vcmask 1041408  }
   0xd   : > { %339 = vst [vmem:[#allocation1] ss:$9 sm:$0xff] %v265_v0  ;;  %s994_s21 = smul.u32 288, %s1164_s15  ;;  %s251_s27 = scalar_lea.vmem %s1156_s2, %s1164_s15 }
   0xe   : > { %s257_s30 = scalar_lea.vmem %s1157_s3, %s1164_s15  ;;  %s263_s7 = scalar_lea.vmem %s1158_s4, %s1164_s15 }
   0xf   : > { %s1095_s24 = scalar_lea.vmem %s1155_s1, %s994_s21 }
  0x10   : > { %v965_v1 = vld [vmem:[%s1095_s24 + $0x38] sm:$0xff]  ;;  %v964_v5 = vld [vmem:[%s1095_s24 + $0x30] sm:$0xff]  ;;  %v963_v9 = vld [vmem:[%s1095_s24 + $0x28] sm:$0xff] }
  0x11   : > { %v973_v2 = vld [vmem:[%s1095_s24 + $0x78] sm:$0xff]  ;;  %568 = vmatpush.bf16.msra.mxu0 %v965_v1  ;;  %v972_v6 = vld [vmem:[%s1095_s24 + $0x70] sm:$0xff]  ;;  %v971_v10 = vld [vmem:[%s1095_s24 + $0x68] sm:$0xff] }
  0x12   : > { %v981_v3 = vld [vmem:[%s1095_s24 + $0xb8] sm:$0xff]  ;;  %581 = vmatpush.bf16.msra.mxu1 %v973_v2  ;;  %v980_v7 = vld [vmem:[%s1095_s24 + $0xb0] sm:$0xff]  ;;  %v979_v11 = vld [vmem:[%s1095_s24 + $0xa8] sm:$0xff] }
  0x13   : > { %v989_v4 = vld [vmem:[%s1095_s24 + $0xf8] sm:$0xff]  ;;  %594 = vmatpush.bf16.msra.mxu2 %v981_v3  ;;  %v988_v8 = vld [vmem:[%s1095_s24 + $0xf0] sm:$0xff]  ;;  %v987_v12 = vld [vmem:[%s1095_s24 + $0xe8] sm:$0xff] }
  0x14   : > { %607 = vmatpush.bf16.msra.mxu3 %v989_v4  ;;  %v962_v13 = vld [vmem:[%s1095_s24 + $0x20] sm:$0xff]  ;;  %v961_v17 = vld [vmem:[%s1095_s24 + $0x18] sm:$0xff]  ;;  %v960_v21 = vld [vmem:[%s1095_s24 + $0x10] sm:$0xff] }
  0x15   : > { %569 = vmatpush.bf16.msra.mxu0 %v964_v5  ;;  %v970_v14 = vld [vmem:[%s1095_s24 + $0x60] sm:$0xff]  ;;  %v969_v18 = vld [vmem:[%s1095_s24 + $0x58] sm:$0xff]  ;;  %v968_v22 = vld [vmem:[%s1095_s24 + $0x50] sm:$0xff] }
  0x16   : > { %582 = vmatpush.bf16.msra.mxu1 %v972_v6  ;;  %v978_v15 = vld [vmem:[%s1095_s24 + $0xa0] sm:$0xff]  ;;  %v977_v19 = vld [vmem:[%s1095_s24 + $0x98] sm:$0xff]  ;;  %v976_v23 = vld [vmem:[%s1095_s24 + $0x90] sm:$0xff] }
  0x17   : > { %595 = vmatpush.bf16.msra.mxu2 %v980_v7  ;;  %v986_v16 = vld [vmem:[%s1095_s24 + $0xe0] sm:$0xff]  ;;  %v985_v20 = vld [vmem:[%s1095_s24 + $0xd8] sm:$0xff]  ;;  %v984_v24 = vld [vmem:[%s1095_s24 + $0xd0] sm:$0xff] }
  0x18   : > { %608 = vmatpush.bf16.msra.mxu3 %v988_v8  ;;  %v959_v25 = vld [vmem:[%s1095_s24 + $0x8] sm:$0xff]  ;;  %v958_v29 = vld [vmem:[%s1095_s24] sm:$0xff]  ;;  %v993_v33 = vld [vmem:[%s1095_s24 + $0x118] sm:$0xff] }
  0x19   : > { %570 = vmatpush.bf16.msra.mxu0 %v963_v9  ;;  %v967_v26 = vld [vmem:[%s1095_s24 + $0x48] sm:$0xff]  ;;  %v966_v30 = vld [vmem:[%s1095_s24 + $0x40] sm:$0xff]  ;;  %v342_v36 = vld [vmem:[#allocation1 + $0x12] sm:$0xff] }
  0x1a   : > { %583 = vmatpush.bf16.msra.mxu1 %v971_v10  ;;  %v975_v27 = vld [vmem:[%s1095_s24 + $0x88] sm:$0xff]  ;;  %v974_v31 = vld [vmem:[%s1095_s24 + $0x80] sm:$0xff]  ;;  %v992_v38 = vld [vmem:[%s1095_s24 + $0x110] sm:$0xff] }
  0x1b   : > { %596 = vmatpush.bf16.msra.mxu2 %v979_v11  ;;  %v983_v28 = vld [vmem:[%s1095_s24 + $0xc8] sm:$0xff]  ;;  %v982_v32 = vld [vmem:[%s1095_s24 + $0xc0] sm:$0xff] }
  0x1c   : > { %609 = vmatpush.bf16.msra.mxu3 %v987_v12  ;;  %v340_v34 = vld [vmem:[#allocation1] sm:$0xff]  ;;  %v341_v35 = vld [vmem:[#allocation1 + $0x9] sm:$0xff] }
  0x1d   : > { %571 = vmatpush.bf16.msra.mxu0 %v962_v13  ;;  %v343_v37 = vld [vmem:[#allocation1 + $0x1b] sm:$0xff]  ;;  %v991_v39 = vld [vmem:[%s1095_s24 + $0x108] sm:$0xff] }
  0x1e   : > { %584 = vmatpush.bf16.msra.mxu1 %v970_v14  ;;  %v990_v40 = vld [vmem:[%s1095_s24 + $0x100] sm:$0xff] }
  0x1f   : > { %597 = vmatpush.bf16.msra.mxu2 %v978_v15  ;;  %v344_v41 = vld [vmem:[#allocation1 + $0x24] sm:$0xff] }
  0x20   : > { %610 = vmatpush.bf16.msra.mxu3 %v986_v16 }
  0x21   : > { %572 = vmatpush.bf16.msra.mxu0 %v961_v17 }
  0x22   : > { %585 = vmatpush.bf16.msra.mxu1 %v969_v18 }
  0x23   : > { %598 = vmatpush.bf16.msra.mxu2 %v977_v19 }
  0x24   : > { %611 = vmatpush.bf16.msra.mxu3 %v985_v20 }
  0x25   : > { %573 = vmatpush.bf16.msra.mxu0 %v960_v21 }
  0x26   : > { %586 = vmatpush.bf16.msra.mxu1 %v968_v22 }
  0x27   : > { %599 = vmatpush.bf16.msra.mxu2 %v976_v23 }
  0x28   : > { %612 = vmatpush.bf16.msra.mxu3 %v984_v24 }
  0x29   : > { %574 = vmatpush.bf16.msra.mxu0 %v959_v25 }
  0x2a   : > { %587 = vmatpush.bf16.msra.mxu1 %v967_v26 }
  0x2b   : > { %600 = vmatpush.bf16.msra.mxu2 %v975_v27 }
  0x2c   : > { %613 = vmatpush.bf16.msra.mxu3 %v983_v28 }
  0x2d   : > { %575 = vmatpush.bf16.msra.mxu0 %v958_v29 }
  0x2e   : > { %588 = vmatpush.bf16.msra.mxu1 %v966_v30 }
  0x2f   : > { %601 = vmatpush.bf16.msra.mxu2 %v974_v31 }
  0x30   : > { %614 = vmatpush.bf16.msra.mxu3 %v982_v32  ;;  %576 = vmatmul.bf16.vlgmr.msra.gmra.mxu0 %v340_v34 }
  0x31   : > { %624 = vmatpush.bf16.msrb.mxu0 %v993_v33  ;;  %589 = vmatmul.bf16.vlgmr.msra.gmra.mxu1 %v341_v35 }
  0x32   : > { %602 = vmatmul.bf16.vlgmr.msra.gmra.mxu2 %v342_v36 }
  0x33   : > { %615 = vmatmul.bf16.vlgmr.msra.gmra.mxu3 %v343_v37 }
  0x35   : > { %625 = vmatpush.bf16.msrb.mxu0 %v992_v38 }
  0x39   : > { %626 = vmatpush.bf16.msrb.mxu0 %v991_v39 }
  0x3d   : > { %627 = vmatpush.bf16.msrb.mxu0 %v990_v40 }
  0x40   : > { %955 = vmatmul.msk.bf16.vlgmr.msrb.gmra.mxu0 %vm565_vm0, %v344_v41 }
  0xad   : > { %v577_v42 = vpop.f32.mrf.mxu0 }
  0xae   : > { %v590_v43 = vpop.f32.mrf.mxu1 }
  0xaf   : > { %v591_v48 = vadd.f32 %v590_v43, %v577_v42 }
  0xb5   : > { %v603_v44 = vpop.f32.mrf.mxu2  ;;  %v579_v46 = vpop.f32.mrf.mxu0 }
  0xb6   : > { %v616_v45 = vpop.f32.mrf.mxu3  ;;  %v592_v47 = vpop.f32.mrf.mxu1  ;;  %v604_v49 = vadd.f32 %v603_v44, %v591_v48 }
  0xb8   : > { %v617_v50 = vadd.f32 %v616_v45, %v604_v49 }
  0xbd   : > { %v605_v51 = vpop.f32.mrf.mxu2  ;;  %v629_v53 = vpop.f32.mrf.mxu0 }
  0xbe   : > { %v618_v52 = vpop.f32.mrf.mxu3  ;;  %v630_v54 = vadd.f32 %v629_v53, %v617_v50 }
  0xc0   : > { %v633_v55 = vpack.c.bf16 %v630_v54, %v630_v54  ;;  %v636_v56 = vsel %vm635_vm1, %v630_v54, 0.0  ;;  %v644_v57 = vmul.f32 %v630_v54, %v630_v54 }
  0xc1   : > { %v637_v58 = vrot.slane %v636_v56, 4 }
  0xc2   : > { %634 = vst [vmem:[%s251_s27] sm:$0x1] %v633_v55  ;;  %v645_v59 = vsel %vm635_vm1, %v644_v57, 0.0 }
  0xc3   : > { %v638_v60 = vadd.f32 %v637_v58, %v636_v56  ;;  %v646_v61 = vrot.slane %v645_v59, 4 }
  0xc5   : > { %v639_v62 = vrot.slane %v638_v60, 2  ;;  %v647_v63 = vadd.f32 %v646_v61, %v645_v59  ;;  %v631_v0 = vpop.f32.mrf.mxu0 }
  0xc7   : > { %v640_v1 = vadd.f32 %v639_v62, %v638_v60  ;;  %v648_v2 = vrot.slane %v647_v63, 2 }
  0xc9   : > { %v641_v3 = vrot.slane %v640_v1, 1  ;;  %v649_v4 = vadd.f32 %v648_v2, %v647_v63 }
  0xcb   : > { %v642_v5 = vadd.f32 %v641_v3, %v640_v1  ;;  %v650_v6 = vrot.slane %v649_v4, 1 }
  0xcd   : > { %643 = vst [vmem:[%s257_s30] sm:$0x1] %v642_v5  ;;  %v651_v7 = vadd.f32 %v650_v6, %v649_v4 }
  0xcf   : > { %652 = vst [vmem:[%s263_s7] sm:$0x1] %v651_v7 }
  0xd0 PF: > { %s15_s17 = sadd.s32 1, %s1041_s17   ;;  %s1159_s15 = smov %s1037_s16 }
  0xd1   : > { %p12_p5 = scmp.ge.s32.totalorder %s15_s17, 6   ;;  %s1160_s16 = smov %s1162_s18 }
  0xd3   :  { %14 = sbr.rel (!%p12_p5) target bundleno = 2 (0x2), region = 85 }

// kernel: fully_conv_network.24
= control target key start
LH: loop header
LB: loop body
LE: loop exit
PB: predicated region body
PF: predicated region fallthrough
CT: control target
= control target key end

     0   :  { %s365_s12 = smov 0   ;;  %s367_s13 = smov 0   ;;  %s392_s0 = inlined_call_operand.vmem [shape: bf16[4,8,128], index: 0, kind: input, shape index: {}]   ;;  %s393_s1 = inlined_call_operand.vmem [shape: f32[1,128], index: 1, kind: input, shape index: {}]   ;;  %s394_s2 = inlined_call_operand.vmem [shape: f32[1,128], index: 2, kind: input, shape index: {}]   ;;  %s395_s3 = inlined_call_operand.vmem [shape: bf16[4,8,128], index: 3, kind: output, shape index: {}]  }
   0x1   :  { %s369_s14 = smov 0  }
   0x2 LB: > { %s22_s15 = sadd.s32 1, %s339_s13  ;;  %p290_p0 = scmp.ge.s32.totalorder %s343_s14, 1  ;;  %s343_s14 = sphi %s369_s14, %s13_s14   ;;  %s339_s13 = sphi %s367_s13, %s397_s13   ;;  %s335_s12 = sphi %s365_s12, %s396_s12  }
   0x3   : > { %p23_p1 = scmp.ge.s32.totalorder %s22_s15, 4  ;;  %p155_p2 = scmp.lt.s32.totalorder %s343_s14, 5 }
   0x5   : > { %s399_s15 = smov (%p23_p1, %s22_s15), 0  ;;  %p156_p3 = pnand %p290_p0, %p155_p2 }
   0x6   : > { %p183_p4 = scmp.lt.s32.totalorder (!%p156_p3), %s335_s12, 3 }
   0x7   : > { %159 = sbr.rel (%p156_p3) target bundleno = 27 (0x1b), region = 32 }
   0xc   : > { %s401_s12 = smov (!%p183_p4, %s335_s12), 3  ;;  %v319_v0 = vld [vmem:[%s393_s1] ss:$0 sm:$0xff] }
   0xd   : > { %s291_s16 = sshll.u32 %s401_s12, 2  ;;  %v320_v3 = vld [vmem:[%s394_s2] ss:$0 sm:$0xff] }
   0xe   : > { %s189_s19 = scalar_lea.vmem %s392_s0, %s291_s16  ;;  %s196_s26 = scalar_lea.vmem %s395_s3, %s291_s16 }
   0xf   : > { %v197_v1 = vld [vmem:[%s189_s19] sm:$0xf] }
  0x10   : > { %v198_v2 = vunpack.c.l.bf16 %v197_v1 }
  0x12   : > { %v203_v4 = vmul.f32 %v319_v0, %v198_v2 }
  0x14   : > { %v208_v5 = vadd.f32 %v320_v3, %v203_v4 }
  0x16   : > { %v209_v6 = vmax.f32 %v208_v5, 0.0 }
  0x18   : > { %v210_v7 = vpack.c.bf16 %v209_v6, %v209_v6 }
  0x1a   : > { %211 = vst [vmem:[%s196_s26] sm:$0xf] %v210_v7 }
  0x1b PF: > { %s13_s14 = sadd.s32 1, %s343_s14   ;;  %s396_s12 = smov %s339_s13 }
  0x1c   : > { %p10_p5 = scmp.ge.s32.totalorder %s13_s14, 6   ;;  %s397_s13 = smov %s399_s15 }
  0x1e   :  { %12 = sbr.rel (!%p10_p5) target bundleno = 2 (0x2), region = 62 }

// kernel: fully_conv_network.23
= control target key start
LH: loop header
LB: loop body
LE: loop exit
PB: predicated region body
PF: predicated region fallthrough
CT: control target
= control target key end

     0   :  { %s818_s15 = smov 0   ;;  %s820_s16 = smov 0   ;;  %s889_s0 = inlined_call_operand.vmem [shape: bf16[8,288], index: 0, kind: input, shape index: {}]   ;;  %s890_s1 = inlined_call_operand.vmem [shape: bf16[4,288,128], index: 1, kind: input, shape index: {}]   ;;  %s891_s2 = inlined_call_operand.vmem [shape: bf16[4,8,128], index: 2, kind: output, shape index: {0}]   ;;  %s892_s3 = inlined_call_operand.vmem [shape: f32[4,1,1,128], index: 3, kind: output, shape index: {1}]   ;;  %s893_s4 = inlined_call_operand.vmem [shape: f32[4,1,1,128], index: 4, kind: output, shape index: {2}]  }
   0x1   :  { %s822_s17 = smov 0  }
   0x2 LB: > { %s24_s18 = sadd.s32 1, %s787_s16  ;;  %p648_p0 = scmp.ge.s32.totalorder %s791_s17, 1  ;;  %s791_s17 = sphi %s822_s17, %s15_s17   ;;  %s787_s16 = sphi %s820_s16, %s895_s16   ;;  %s783_s15 = sphi %s818_s15, %s894_s15  }
   0x3   : > { %p25_p1 = scmp.ge.s32.totalorder %s24_s18, 4  ;;  %p195_p2 = scmp.lt.s32.totalorder %s791_s17, 5 }
   0x5   : > { %s897_s18 = smov (%p25_p1, %s24_s18), 0  ;;  %p196_p3 = pnand %p648_p0, %p195_p2 }
   0x6   : > { %p245_p4 = scmp.lt.s32.totalorder (!%p196_p3), %s783_s15, 3 }
   0x7   : > { %199 = sbr.rel (%p196_p3) target bundleno = 194 (0xc2), region = 28 }
   0xc   : > { %s899_s15 = smov (!%p245_p4, %s783_s15), 3  ;;  %v271_v2 = vld [vmem:[%s889_s0 + $0x8] sm:$0xf]  ;;  %vm426_vm0 = vcmask 261120   ;;  %v270_v19 = vld [vmem:[%s889_s0] sm:$0xff] }
   0xd   : > { %s744_s19 = smul.u32 144, %s899_s15  ;;  %v312_v6 = vunpack.c.l.b16 %v271_v2  ;;  %v310_v20 = vunpack.c.l.b16 %v270_v19  ;;  %v311_v21 = vunpack.c.h.b16 %v270_v19  ;;  %s650_s27 = sshll.u32 %s899_s15, 2 }
   0xe   : > { %s256_s30 = scalar_lea.vmem %s891_s2, %s650_s27  ;;  %s262_s7 = scalar_lea.vmem %s892_s3, %s899_s15 }
   0xf   : > { %s842_s22 = scalar_lea.vmem %s890_s1, %s744_s19  ;;  %v315_v10 = vpack.c.b16 %v312_v6, %v312_v6  ;;  %v313_v24 = vpack.c.b16 %v310_v20, %v310_v20  ;;  %v314_v25 = vpack.c.b16 %v311_v21, %v311_v21  ;;  %s268_s10 = scalar_lea.vmem %s893_s4, %s899_s15 }
  0x10   : > { %v733_v0 = vld [vmem:[%s842_s22 + $0x38] sm:$0xff]  ;;  %v732_v3 = vld [vmem:[%s842_s22 + $0x30] sm:$0xff]  ;;  %v743_v5 = vld [vmem:[%s842_s22 + $0x88] sm:$0xff] }
  0x11   : > { %v741_v1 = vld [vmem:[%s842_s22 + $0x78] sm:$0xff]  ;;  %430 = vmatpush.bf16.msra.mxu0 %v733_v0  ;;  %v740_v4 = vld [vmem:[%s842_s22 + $0x70] sm:$0xff]  ;;  %462 = vmatpush.bf16.msra.mxu2 %v743_v5  ;;  %v742_v7 = vld [vmem:[%s842_s22 + $0x80] sm:$0xff] }
  0x12   : > { %443 = vmatpush.bf16.msra.mxu1 %v741_v1  ;;  %v731_v8 = vld [vmem:[%s842_s22 + $0x28] sm:$0xff]  ;;  %v730_v11 = vld [vmem:[%s842_s22 + $0x20] sm:$0xff]  ;;  %v729_v13 = vld [vmem:[%s842_s22 + $0x18] sm:$0xff] }
  0x13   : > { %v739_v9 = vld [vmem:[%s842_s22 + $0x68] sm:$0xff]  ;;  %v738_v12 = vld [vmem:[%s842_s22 + $0x60] sm:$0xff]  ;;  %v737_v14 = vld [vmem:[%s842_s22 + $0x58] sm:$0xff] }
  0x14   : > { %v728_v15 = vld [vmem:[%s842_s22 + $0x10] sm:$0xff]  ;;  %v727_v17 = vld [vmem:[%s842_s22 + $0x8] sm:$0xff]  ;;  %v726_v22 = vld [vmem:[%s842_s22] sm:$0xff] }
  0x15   : > { %431 = vmatpush.bf16.msra.mxu0 %v732_v3  ;;  %463 = vmatpush.bf16.msra.mxu2 %v742_v7  ;;  %v736_v16 = vld [vmem:[%s842_s22 + $0x50] sm:$0xff]  ;;  %v735_v18 = vld [vmem:[%s842_s22 + $0x48] sm:$0xff]  ;;  %v734_v23 = vld [vmem:[%s842_s22 + $0x40] sm:$0xff] }
  0x16   : > { %444 = vmatpush.bf16.msra.mxu1 %v740_v4 }
  0x18   : > { %723 = vmatmul.msk.bf16.vlgmr.msra.gmra.mxu2 %vm426_vm0, %v315_v10 }
  0x19   : > { %432 = vmatpush.bf16.msra.mxu0 %v731_v8 }
  0x1a   : > { %445 = vmatpush.bf16.msra.mxu1 %v739_v9 }
  0x1d   : > { %433 = vmatpush.bf16.msra.mxu0 %v730_v11 }
  0x1e   : > { %446 = vmatpush.bf16.msra.mxu1 %v738_v12 }
  0x21   : > { %434 = vmatpush.bf16.msra.mxu0 %v729_v13 }
  0x22   : > { %447 = vmatpush.bf16.msra.mxu1 %v737_v14 }
  0x25   : > { %435 = vmatpush.bf16.msra.mxu0 %v728_v15 }
  0x26   : > { %448 = vmatpush.bf16.msra.mxu1 %v736_v16 }
  0x29   : > { %436 = vmatpush.bf16.msra.mxu0 %v727_v17 }
  0x2a   : > { %449 = vmatpush.bf16.msra.mxu1 %v735_v18 }
  0x2d   : > { %437 = vmatpush.bf16.msra.mxu0 %v726_v22 }
  0x2e   : > { %450 = vmatpush.bf16.msra.mxu1 %v734_v23 }
  0x30   : > { %438 = vmatmul.bf16.vlgmr.msra.gmra.mxu0 %v313_v24 }
  0x31   : > { %451 = vmatmul.bf16.vlgmr.msra.gmra.mxu1 %v314_v25 }
  0x9b   : > { %v465_v26 = vpop.f32.mrf.mxu2 }
  0xa3   : > { %v467_v27 = vpop.f32.mrf.mxu2 }
  0xad   : > { %v439_v28 = vpop.f32.mrf.mxu0 }
  0xae   : > { %v452_v29 = vpop.f32.mrf.mxu1 }
  0xaf   : > { %v453_v30 = vadd.f32 %v452_v29, %v439_v28 }
  0xb1   : > { %v466_v31 = vadd.f32 %v465_v26, %v453_v30 }
  0xb3   : > { %v469_v32 = vpack.c.bf16 %v466_v31, %v466_v31  ;;  %v471_v33 = vrot.slane %v466_v31, 4  ;;  %v478_v34 = vmul.f32 %v466_v31, %v466_v31 }
  0xb5   : > { %470 = vst [vmem:[%s256_s30] sm:$0xf] %v469_v32  ;;  %v472_v35 = vadd.f32 %v471_v33, %v466_v31  ;;  %v479_v36 = vrot.slane %v478_v34, 4  ;;  %v441_v37 = vpop.f32.mrf.mxu0 }
  0xb6   : > { %v454_v38 = vpop.f32.mrf.mxu1 }
  0xb7   : > { %v473_v39 = vrot.slane %v472_v35, 2  ;;  %v480_v40 = vadd.f32 %v479_v36, %v478_v34 }
  0xb9   : > { %v474_v41 = vadd.f32 %v473_v39, %v472_v35  ;;  %v481_v42 = vrot.slane %v480_v40, 2 }
  0xbb   : > { %v475_v43 = vrot.slane %v474_v41, 1  ;;  %v482_v44 = vadd.f32 %v481_v42, %v480_v40 }
  0xbd   : > { %v476_v45 = vadd.f32 %v475_v43, %v474_v41  ;;  %v483_v46 = vrot.slane %v482_v44, 1 }
  0xbf   : > { %477 = vst [vmem:[%s262_s7] sm:$0x1] %v476_v45  ;;  %v484_v47 = vadd.f32 %v483_v46, %v482_v44 }
  0xc1   : > { %485 = vst [vmem:[%s268_s10] sm:$0x1] %v484_v47 }
  0xc2 PF: > { %s15_s17 = sadd.s32 1, %s791_s17   ;;  %s894_s15 = smov %s787_s16 }
  0xc3   : > { %p12_p5 = scmp.ge.s32.totalorder %s15_s17, 6   ;;  %s895_s16 = smov %s897_s18 }
  0xc5   :  { %14 = sbr.rel (!%p12_p5) target bundleno = 2 (0x2), region = 85 }

// kernel: fully_conv_network.26
= control target key start
LH: loop header
LB: loop body
LE: loop exit
PB: predicated region body
PF: predicated region fallthrough
CT: control target
= control target key end

     0   :  { %s436_s12 = smov 0   ;;  %s438_s13 = smov 0   ;;  %s475_s0 = inlined_call_operand.vmem [shape: bf16[4,32,128], index: 0, kind: input, shape index: {}]   ;;  %s476_s1 = inlined_call_operand.vmem [shape: f32[1,128], index: 1, kind: input, shape index: {}]   ;;  %s477_s2 = inlined_call_operand.vmem [shape: f32[1,128], index: 2, kind: input, shape index: {}]   ;;  %s478_s3 = inlined_call_operand.vmem [shape: bf16[4,32,128], index: 3, kind: output, shape index: {}]  }
   0x1   :  { %s440_s14 = smov 0  }
   0x2 LB: > { %s22_s15 = sadd.s32 1, %s410_s13  ;;  %p337_p0 = scmp.ge.s32.totalorder %s414_s14, 1  ;;  %s414_s14 = sphi %s440_s14, %s13_s14   ;;  %s410_s13 = sphi %s438_s13, %s480_s13   ;;  %s406_s12 = sphi %s436_s12, %s479_s12  }
   0x3   : > { %p23_p1 = scmp.ge.s32.totalorder %s22_s15, 4  ;;  %p158_p2 = scmp.lt.s32.totalorder %s414_s14, 5 }
   0x5   : > { %s482_s15 = smov (%p23_p1, %s22_s15), 0  ;;  %p159_p3 = pnand %p337_p0, %p158_p2 }
   0x6   : > { %p191_p4 = scmp.lt.s32.totalorder (!%p159_p3), %s406_s12, 3 }
   0x7   : > { %162 = sbr.rel (%p159_p3) target bundleno = 28 (0x1c), region = 32 }
   0xc   : > { %s484_s12 = smov (!%p191_p4, %s406_s12), 3  ;;  %v390_v0 = vld [vmem:[%s476_s1] ss:$0 sm:$0xff] }
   0xd   : > { %s344_s16 = sshll.u32 %s484_s12, 4  ;;  %v391_v7 = vld [vmem:[%s477_s2] ss:$0 sm:$0xff] }
   0xe   : > { %s198_s19 = scalar_lea.vmem %s475_s0, %s344_s16  ;;  %s208_s26 = scalar_lea.vmem %s478_s3, %s344_s16 }
   0xf   : > { %v347_v1 = vld [vmem:[%s198_s19] sm:$0xff]   ;;  %v364_v2 = vld [vmem:[%s198_s19 + $0x8] sm:$0xff]  }
  0x10   : > { %v348_v3 = vunpack.c.l.bf16 %v347_v1  ;;  %v349_v4 = vunpack.c.h.bf16 %v347_v1  ;;  %v352_v5 = vunpack.c.l.bf16 %v364_v2  ;;  %v353_v6 = vunpack.c.h.bf16 %v364_v2 }
  0x12   : > { %v222_v8 = vmul.f32 %v390_v0, %v348_v3  ;;  %v223_v9 = vmul.f32 %v390_v0, %v349_v4  ;;  %v224_v10 = vmul.f32 %v390_v0, %v352_v5  ;;  %v225_v11 = vmul.f32 %v390_v0, %v353_v6 }
  0x14   : > { %v230_v12 = vadd.f32 %v391_v7, %v222_v8  ;;  %v231_v13 = vadd.f32 %v391_v7, %v223_v9  ;;  %v232_v14 = vadd.f32 %v391_v7, %v224_v10  ;;  %v233_v15 = vadd.f32 %v391_v7, %v225_v11 }
  0x16   : > { %v234_v16 = vmax.f32 %v230_v12, 0.0  ;;  %v235_v17 = vmax.f32 %v231_v13, 0.0  ;;  %v236_v18 = vmax.f32 %v232_v14, 0.0  ;;  %v237_v19 = vmax.f32 %v233_v15, 0.0 }
  0x18   : > { %v357_v20 = vpack.c.bf16 %v235_v17, %v234_v16  ;;  %v362_v21 = vpack.c.bf16 %v237_v19, %v236_v18 }
  0x1a   : > { %358 = vst [vmem:[%s208_s26] sm:$0xff] %v357_v20  }
  0x1b   : > { %365 = vst [vmem:[%s208_s26 + $0x8] sm:$0xff] %v362_v21  }
  0x1c PF: > { %s13_s14 = sadd.s32 1, %s414_s14   ;;  %s479_s12 = smov %s410_s13 }
  0x1d   : > { %p10_p5 = scmp.ge.s32.totalorder %s13_s14, 6   ;;  %s480_s13 = smov %s482_s15 }
  0x1f   :  { %12 = sbr.rel (!%p10_p5) target bundleno = 2 (0x2), region = 62 }

// kernel: fully_conv_network.25
= control target key start
LH: loop header
LB: loop body
LE: loop exit
PB: predicated region body
PF: predicated region fallthrough
CT: control target
= control target key end

     0   :  { %s789_s15 = smov 0   ;;  %s791_s16 = smov 0   ;;  %s871_s0 = inlined_call_operand.vmem [shape: bf16[32,144], index: 0, kind: input, shape index: {}]   ;;  %s872_s1 = inlined_call_operand.vmem [shape: bf16[4,144,128], index: 1, kind: input, shape index: {}]   ;;  %s873_s2 = inlined_call_operand.vmem [shape: bf16[4,32,128], index: 2, kind: output, shape index: {0}]   ;;  %s874_s3 = inlined_call_operand.vmem [shape: f32[4,1,1,128], index: 3, kind: output, shape index: {1}]   ;;  %s875_s4 = inlined_call_operand.vmem [shape: f32[4,1,1,128], index: 4, kind: output, shape index: {2}]  }
   0x1   :  { %s793_s17 = smov 0  }
   0x2 LB: > { %s24_s18 = sadd.s32 1, %s758_s16  ;;  %p622_p0 = scmp.ge.s32.totalorder %s762_s17, 1  ;;  %s762_s17 = sphi %s793_s17, %s15_s17   ;;  %s758_s16 = sphi %s791_s16, %s877_s16   ;;  %s754_s15 = sphi %s789_s15, %s876_s15  }
   0x3   : > { %p25_p1 = scmp.ge.s32.totalorder %s24_s18, 4  ;;  %p197_p2 = scmp.lt.s32.totalorder %s762_s17, 5 }
   0x5   : > { %s879_s18 = smov (%p25_p1, %s24_s18), 0  ;;  %p198_p3 = pnand %p622_p0, %p197_p2 }
   0x6   : > { %p252_p4 = scmp.lt.s32.totalorder (!%p198_p3), %s754_s15, 3 }
   0x7   : > { %201 = sbr.rel (%p198_p3) target bundleno = 207 (0xcf), region = 28 }
   0xc   : > { %s881_s15 = smov (!%p252_p4, %s754_s15), 3  ;;  %v683_v1 = vld [vmem:[%s871_s0 + $0x4] sm:$0xf]  ;;  %v630_v2 = vld [vmem:[%s871_s0 + $0x8] sm:$0xf0]  ;;  %vm374_vm0 = vcmask 130048  }
   0xd   : > { %s715_s19 = smul.u32 72, %s881_s15  ;;  %v633_v5 = vor.u32 %v683_v1, %v630_v2  ;;  %v685_v9 = vld [vmem:[%s871_s0 + $0x14] sm:$0xf]  ;;  %v638_v10 = vld [vmem:[%s871_s0 + $0x18] sm:$0xf0]  ;;  %s682_s13 = sshll.u32 %s881_s15, 4 }
   0xe   : > { %v641_v12 = vor.u32 %v685_v9, %v638_v10  ;;  %v628_v14 = vld [vmem:[%s871_s0] sm:$0xf]  ;;  %v684_v15 = vld [vmem:[%s871_s0 + $0x4] sm:$0xf0]  ;;  %v636_v17 = vld [vmem:[%s871_s0 + $0x10] sm:$0xf]  ;;  %s265_s20 = scalar_lea.vmem %s873_s2, %s682_s13  ;;  %s272_s23 = scalar_lea.vmem %s874_s3, %s881_s15 }
   0xf   : > { %s813_s22 = scalar_lea.vmem %s872_s1, %s715_s19  ;;  %v686_v18 = vld [vmem:[%s871_s0 + $0x14] sm:$0xf0]  ;;  %v629_v19 = vor.u32 %v684_v15, %v628_v14  ;;  %s278_s26 = scalar_lea.vmem %s875_s4, %s881_s15 }
  0x10   : > { %v694_v0 = vld [vmem:[%s813_s22 + $0x38] sm:$0xff]  ;;  %v695_v3 = vld [vmem:[%s813_s22 + $0x40] sm:$0xff]  ;;  %v693_v4 = vld [vmem:[%s813_s22 + $0x30] sm:$0xff]  ;;  %v637_v20 = vor.u32 %v686_v18, %v636_v17 }
  0x11   : > { %381 = vmatpush.bf16.msra.mxu0 %v694_v0  ;;  %707 = vmatpush.bf16.msra.mxu2 %v694_v0  ;;  %v692_v6 = vld [vmem:[%s813_s22 + $0x28] sm:$0xff]  ;;  %v691_v7 = vld [vmem:[%s813_s22 + $0x20] sm:$0xff]  ;;  %v690_v8 = vld [vmem:[%s813_s22 + $0x18] sm:$0xff] }
  0x12   : > { %407 = vmatpush.bf16.msra.mxu1 %v695_v3  ;;  %v689_v11 = vld [vmem:[%s813_s22 + $0x10] sm:$0xff]  ;;  %v688_v13 = vld [vmem:[%s813_s22 + $0x8] sm:$0xff]  ;;  %v687_v16 = vld [vmem:[%s813_s22] sm:$0xff] }
  0x15   : > { %382 = vmatpush.bf16.msra.mxu0 %v693_v4  ;;  %708 = vmatpush.bf16.msra.mxu2 %v693_v4 }
  0x16   : > { %678 = vmatmul.msk.bf16.vlgmr.msra.gmra.mxu1 %vm374_vm0, %v633_v5 }
  0x19   : > { %383 = vmatpush.bf16.msra.mxu0 %v692_v6  ;;  %709 = vmatpush.bf16.msra.mxu2 %v692_v6 }
  0x1d   : > { %384 = vmatpush.bf16.msra.mxu0 %v691_v7  ;;  %710 = vmatpush.bf16.msra.mxu2 %v691_v7 }
  0x21   : > { %385 = vmatpush.bf16.msra.mxu0 %v690_v8  ;;  %711 = vmatpush.bf16.msra.mxu2 %v690_v8 }
  0x25   : > { %386 = vmatpush.bf16.msra.mxu0 %v689_v11  ;;  %712 = vmatpush.bf16.msra.mxu2 %v689_v11 }
  0x26   : > { %679 = vmatmul.msk.bf16.gmra.mxu1 %vm374_vm0, %v641_v12 }
  0x29   : > { %387 = vmatpush.bf16.msra.mxu0 %v688_v13  ;;  %713 = vmatpush.bf16.msra.mxu2 %v688_v13 }
  0x2d   : > { %388 = vmatpush.bf16.msra.mxu0 %v687_v16  ;;  %714 = vmatpush.bf16.msra.mxu2 %v687_v16 }
  0x30   : > { %389 = vmatmul.bf16.vlgmr.msra.gmra.mxu0 %v629_v19  ;;  %394 = vmatmul.bf16.vlgmr.msra.gmra.mxu2 %v637_v20 }
  0x93   : > { %v409_v21 = vpop.f32.mrf.mxu1 }
  0x9b   : > { %v411_v22 = vpop.f32.mrf.mxu1 }
  0xa3   : > { %v414_v24 = vpop.f32.mrf.mxu1 }
  0xab   : > { %v416_v35 = vpop.f32.mrf.mxu1 }
  0xad   : > { %v390_v23 = vpop.f32.mrf.mxu0 }
  0xae   : > { %v410_v25 = vadd.f32 %v409_v21, %v390_v23 }
  0xb0   : > { %v437_v29 = vmul.f32 %v410_v25, %v410_v25 }
  0xb3   : > { %v395_v26 = vpop.f32.mrf.mxu2 }
  0xb4   : > { %v415_v30 = vadd.f32 %v414_v24, %v395_v26 }
  0xb5   : > { %v392_v27 = vpop.f32.mrf.mxu0 }
  0xb6   : > { %v412_v28 = vadd.f32 %v411_v22, %v392_v27  ;;  %v439_v37 = vmul.f32 %v415_v30, %v415_v30 }
  0xb8   : > { %v699_v31 = vpack.c.bf16 %v412_v28, %v410_v25  ;;  %v427_v32 = vadd.f32 %v412_v28, %v410_v25  ;;  %v438_v33 = vmul.f32 %v412_v28, %v412_v28 }
  0xba   : > { %700 = vst [vmem:[%s265_s20] sm:$0xff] %v699_v31   ;;  %v441_v34 = vadd.f32 %v438_v33, %v437_v29  ;;  %v428_v39 = vadd.f32 %v427_v32, %v415_v30 }
  0xbb   : > { %v397_v36 = vpop.f32.mrf.mxu2 }
  0xbc   : > { %v417_v38 = vadd.f32 %v416_v35, %v397_v36  ;;  %v442_v43 = vadd.f32 %v441_v34, %v439_v37 }
  0xbe   : > { %v704_v40 = vpack.c.bf16 %v417_v38, %v415_v30  ;;  %v429_v41 = vadd.f32 %v428_v39, %v417_v38  ;;  %v440_v42 = vmul.f32 %v417_v38, %v417_v38 }
  0xc0   : > { %706 = vst [vmem:[%s265_s20 + $0x8] sm:$0xff] %v704_v40   ;;  %v430_v44 = vrot.slane %v429_v41, 4  ;;  %v443_v45 = vadd.f32 %v442_v43, %v440_v42 }
  0xc2   : > { %v431_v46 = vadd.f32 %v430_v44, %v429_v41  ;;  %v444_v47 = vrot.slane %v443_v45, 4 }
  0xc4   : > { %v432_v48 = vrot.slane %v431_v46, 2  ;;  %v445_v49 = vadd.f32 %v444_v47, %v443_v45 }
  0xc6   : > { %v433_v50 = vadd.f32 %v432_v48, %v431_v46  ;;  %v446_v51 = vrot.slane %v445_v49, 2 }
  0xc8   : > { %v434_v52 = vrot.slane %v433_v50, 1  ;;  %v447_v53 = vadd.f32 %v446_v51, %v445_v49 }
  0xca   : > { %v435_v54 = vadd.f32 %v434_v52, %v433_v50  ;;  %v448_v55 = vrot.slane %v447_v53, 1 }
  0xcc   : > { %436 = vst [vmem:[%s272_s23] sm:$0x1] %v435_v54  ;;  %v449_v56 = vadd.f32 %v448_v55, %v447_v53 }
  0xce   : > { %450 = vst [vmem:[%s278_s26] sm:$0x1] %v449_v56 }
  0xcf PF: > { %s15_s17 = sadd.s32 1, %s762_s17   ;;  %s876_s15 = smov %s758_s16 }
  0xd0   : > { %p12_p5 = scmp.ge.s32.totalorder %s15_s17, 6   ;;  %s877_s16 = smov %s879_s18 }
  0xd2   :  { %14 = sbr.rel (!%p12_p5) target bundleno = 2 (0x2), region = 85 }

// kernel: fully_conv_network.27
= control target key start
LH: loop header
LB: loop body
LE: loop exit
PB: predicated region body
PF: predicated region fallthrough
CT: control target
= control target key end

     0   :  { %s669_s12 = smov 0   ;;  %s671_s13 = smov 0   ;;  %s775_s0 = inlined_call_operand.vmem [shape: bf16[128,72], index: 0, kind: input, shape index: {}]   ;;  %s776_s1 = inlined_call_operand.vmem [shape: bf16[4,72,8], index: 1, kind: input, shape index: {}]   ;;  %s777_s2 = inlined_call_operand.vmem [shape: f32[1,8], index: 2, kind: input, shape index: {}]   ;;  %s778_s3 = inlined_call_operand.vmem [shape: f32[4,128,8], index: 3, kind: output, shape index: {}]  }
   0x1   :  { %s673_s14 = smov 0  }
   0x2 LB: > { %s22_s15 = sadd.s32 1, %s643_s13  ;;  %p509_p0 = scmp.ge.s32.totalorder %s647_s14, 1  ;;  %s647_s14 = sphi %s673_s14, %s13_s14   ;;  %s643_s13 = sphi %s671_s13, %s780_s13   ;;  %s639_s12 = sphi %s669_s12, %s779_s12  }
   0x3   : > { %p23_p1 = scmp.ge.s32.totalorder %s22_s15, 4  ;;  %p162_p2 = scmp.lt.s32.totalorder %s647_s14, 5 }
   0x5   : > { %s782_s15 = smov (%p23_p1, %s22_s15), 0  ;;  %p163_p3 = pnand %p509_p0, %p162_p2 }
   0x6   : > { %p201_p4 = scmp.lt.s32.totalorder (!%p163_p3), %s639_s12, 3 }
   0x7   : > { %166 = sbr.rel (%p163_p3) target bundleno = 202 (0xca), region = 32 }
   0xc   : > { %s784_s12 = smov (!%p201_p4, %s639_s12), 3  ;;  %vm338_vm0 = vcmask 1043456   ;;  %v572_v8 = vld [vmem:[%s775_s0] sm:$0xff]  ;;  %v574_v9 = vld [vmem:[%s775_s0 + $0x10] sm:$0xff]  ;;  %vm313_vm1 = vcmask 588800   ;;  %v573_v12 = vld [vmem:[%s775_s0 + $0x8] sm:$0xff] }
   0xd   : > { %s599_s16 = smul.u32 36, %s784_s12  ;;  %v576_v10 = vld [vmem:[%s775_s0 + $0x20] sm:$0xff]  ;;  %v578_v11 = vld [vmem:[%s775_s0 + $0x30] sm:$0xff]  ;;  %v575_v13 = vld [vmem:[%s775_s0 + $0x18] sm:$0xff]  ;;  %s571_s9 = sshll.u32 %s784_s12, 7  ;;  %vm391_vm2 = vcmask 64512  }
   0xe   : > { %v577_v14 = vld [vmem:[%s775_s0 + $0x28] sm:$0xff]  ;;  %v579_v15 = vld [vmem:[%s775_s0 + $0x38] sm:$0xff]  ;;  %v624_v16 = vld [vmem:[%s777_s2] ss:$0 sm:$0xff]  ;;  %s732_s18 = scalar_lea.vmem %s778_s3, %s571_s9 }
   0xf   : > { %s205_s19 = scalar_lea.vmem %s776_s1, %s599_s16 }
  0x10   : > { %v241_v0 = vld [vmem:[%s205_s19 + $0x20] sm:$0xf]  ;;  %v583_v4 = vld [vmem:[%s205_s19 + $0x18] sm:$0xff]  ;;  %v582_v5 = vld [vmem:[%s205_s19 + $0x10] sm:$0xff] }
  0x11   : > { %v303_v1 = vunpack.c.l.b16 %v241_v0  ;;  %v581_v6 = vld [vmem:[%s205_s19 + $0x8] sm:$0xff]  ;;  %v580_v7 = vld [vmem:[%s205_s19] sm:$0xff] }
  0x13   : > { %v308_v2 = vpack.c.b16 %v303_v1, %v303_v1 }
  0x15   : > { %v340_v3 = vsel %vm338_vm0, %v308_v2, 0 }
  0x16   : > { %345 = vmatpush.bf16.msra.mxu0 %v340_v3  ;;  %584 = vmatpush.bf16.msra.mxu1 %v340_v3 }
  0x17   : > { %585 = vmatpush.bf16.msra.mxu2 %v340_v3  ;;  %586 = vmatpush.bf16.msra.mxu3 %v340_v3 }
  0x1a   : > { %346 = vmatpush.bf16.msra.mxu0 %v583_v4  ;;  %587 = vmatpush.bf16.msra.mxu1 %v583_v4 }
  0x1b   : > { %588 = vmatpush.bf16.msra.mxu2 %v583_v4  ;;  %589 = vmatpush.bf16.msra.mxu3 %v583_v4 }
  0x1e   : > { %347 = vmatpush.bf16.msra.mxu0 %v582_v5  ;;  %590 = vmatpush.bf16.msra.mxu1 %v582_v5 }
  0x1f   : > { %591 = vmatpush.bf16.msra.mxu2 %v582_v5  ;;  %592 = vmatpush.bf16.msra.mxu3 %v582_v5 }
  0x22   : > { %348 = vmatpush.bf16.msra.mxu0 %v581_v6  ;;  %593 = vmatpush.bf16.msra.mxu1 %v581_v6 }
  0x23   : > { %594 = vmatpush.bf16.msra.mxu2 %v581_v6  ;;  %595 = vmatpush.bf16.msra.mxu3 %v581_v6 }
  0x26   : > { %349 = vmatpush.bf16.msra.mxu0 %v580_v7  ;;  %596 = vmatpush.bf16.msra.mxu1 %v580_v7 }
  0x27   : > { %597 = vmatpush.bf16.msra.mxu2 %v580_v7  ;;  %598 = vmatpush.bf16.msra.mxu3 %v580_v7 }
  0x29   : > { %561 = vmatmul.msk.bf16.vlgmr.msra.gmra.mxu0 %vm313_vm1, %v572_v8  ;;  %563 = vmatmul.msk.bf16.vlgmr.msra.gmra.mxu1 %vm313_vm1, %v574_v9 }
  0x2a   : > { %565 = vmatmul.msk.bf16.vlgmr.msra.gmra.mxu2 %vm313_vm1, %v576_v10  ;;  %567 = vmatmul.msk.bf16.vlgmr.msra.gmra.mxu3 %vm313_vm1, %v578_v11 }
  0x39   : > { %562 = vmatmul.msk.bf16.gmra.mxu0 %vm313_vm1, %v573_v12  ;;  %564 = vmatmul.msk.bf16.gmra.mxu1 %vm313_vm1, %v575_v13 }
  0x3a   : > { %566 = vmatmul.msk.bf16.gmra.mxu2 %vm313_vm1, %v577_v14  ;;  %568 = vmatmul.msk.bf16.gmra.mxu3 %vm313_vm1, %v579_v15 }
  0xa6   : > { %v351_v17 = vpop.f32.mrf.mxu0  ;;  %v361_v18 = vpop.f32.mrf.mxu1 }
  0xa7   : > { %v352_v19 = vadd.f32 %v624_v16, %v351_v17  ;;  %v362_v20 = vadd.f32 %v624_v16, %v361_v18 }
  0xa9   : > { %392 = vst.msk [vmem:[%s732_s18] sm:$0xff] %vm391_vm2, %v352_v19 }
  0xaa   : > { %396 = vst.msk [vmem:[%s732_s18 + $0x20] sm:$0xff] %vm391_vm2, %v362_v20 }
  0xad   : > { %v371_v21 = vpop.f32.mrf.mxu2  ;;  %v381_v22 = vpop.f32.mrf.mxu3 }
  0xae   : > { %v372_v23 = vadd.f32 %v624_v16, %v371_v21  ;;  %v382_v24 = vadd.f32 %v624_v16, %v381_v22  ;;  %v353_v25 = vpop.f32.mrf.mxu0  ;;  %v363_v26 = vpop.f32.mrf.mxu1 }
  0xaf   : > { %v354_v27 = vadd.f32 %v624_v16, %v353_v25  ;;  %v364_v28 = vadd.f32 %v624_v16, %v363_v26 }
  0xb0   : > { %400 = vst.msk [vmem:[%s732_s18 + $0x40] sm:$0xff] %vm391_vm2, %v372_v23 }
  0xb1   : > { %404 = vst.msk [vmem:[%s732_s18 + $0x60] sm:$0xff] %vm391_vm2, %v382_v24 }
  0xb2   : > { %393 = vst.msk [vmem:[%s732_s18 + $0x8] sm:$0xff] %vm391_vm2, %v354_v27 }
  0xb3   : > { %397 = vst.msk [vmem:[%s732_s18 + $0x28] sm:$0xff] %vm391_vm2, %v364_v28 }
  0xb5   : > { %v373_v29 = vpop.f32.mrf.mxu2  ;;  %v383_v30 = vpop.f32.mrf.mxu3 }
  0xb6   : > { %v374_v31 = vadd.f32 %v624_v16, %v373_v29  ;;  %v384_v32 = vadd.f32 %v624_v16, %v383_v30  ;;  %v356_v33 = vpop.f32.mrf.mxu0  ;;  %v366_v34 = vpop.f32.mrf.mxu1 }
  0xb7   : > { %v357_v35 = vadd.f32 %v624_v16, %v356_v33  ;;  %v367_v36 = vadd.f32 %v624_v16, %v366_v34 }
  0xb8   : > { %401 = vst.msk [vmem:[%s732_s18 + $0x48] sm:$0xff] %vm391_vm2, %v374_v31 }
  0xb9   : > { %405 = vst.msk [vmem:[%s732_s18 + $0x68] sm:$0xff] %vm391_vm2, %v384_v32 }
  0xba   : > { %394 = vst.msk [vmem:[%s732_s18 + $0x10] sm:$0xff] %vm391_vm2, %v357_v35 }
  0xbb   : > { %398 = vst.msk [vmem:[%s732_s18 + $0x30] sm:$0xff] %vm391_vm2, %v367_v36 }
  0xbd   : > { %v376_v37 = vpop.f32.mrf.mxu2  ;;  %v386_v38 = vpop.f32.mrf.mxu3 }
  0xbe   : > { %v377_v39 = vadd.f32 %v624_v16, %v376_v37  ;;  %v387_v40 = vadd.f32 %v624_v16, %v386_v38  ;;  %v358_v41 = vpop.f32.mrf.mxu0  ;;  %v368_v42 = vpop.f32.mrf.mxu1 }
  0xbf   : > { %v359_v43 = vadd.f32 %v624_v16, %v358_v41  ;;  %v369_v44 = vadd.f32 %v624_v16, %v368_v42 }
  0xc0   : > { %402 = vst.msk [vmem:[%s732_s18 + $0x50] sm:$0xff] %vm391_vm2, %v377_v39 }
  0xc1   : > { %406 = vst.msk [vmem:[%s732_s18 + $0x70] sm:$0xff] %vm391_vm2, %v387_v40 }
  0xc2   : > { %395 = vst.msk [vmem:[%s732_s18 + $0x18] sm:$0xff] %vm391_vm2, %v359_v43 }
  0xc3   : > { %399 = vst.msk [vmem:[%s732_s18 + $0x38] sm:$0xff] %vm391_vm2, %v369_v44 }
  0xc5   : > { %v378_v45 = vpop.f32.mrf.mxu2  ;;  %v388_v46 = vpop.f32.mrf.mxu3 }
  0xc6   : > { %v379_v47 = vadd.f32 %v624_v16, %v378_v45  ;;  %v389_v48 = vadd.f32 %v624_v16, %v388_v46 }
  0xc8   : > { %403 = vst.msk [vmem:[%s732_s18 + $0x58] sm:$0xff] %vm391_vm2, %v379_v47 }
  0xc9   : > { %407 = vst.msk [vmem:[%s732_s18 + $0x78] sm:$0xff] %vm391_vm2, %v389_v48 }
  0xca PF: > { %s13_s14 = sadd.s32 1, %s647_s14   ;;  %s779_s12 = smov %s643_s13 }
  0xcb   : > { %p10_p5 = scmp.ge.s32.totalorder %s13_s14, 6   ;;  %s780_s13 = smov %s782_s15 }
  0xcd   :  { %12 = sbr.rel (!%p10_p5) target bundleno = 2 (0x2), region = 65 }

</bundles_post_ra>
